<compile_context>
chip_gen: v5e
topology: v5e:2x2
jax: 0.10.0
libtpu: 0.0.40
codegen_flags: <defaults>
</compile_context>

<pallas_src>
import functools

import jax
import jax.numpy as jnp
from jax import lax
from jax.experimental import pallas as pl
from jax.experimental.pallas import tpu as pltpu

K = 4        # depthwise kernel size
STRIDE = 2
PAD = 1


def _dwsep_kernel(x_ref, wdw_ref, bdw_ref, wpw_ref, bpw_ref, o_ref, *, wp):
    # x_ref:   (nb, Cin, 4, Lin)  VMEM  phase-folded input, flat spatial on lanes;
    #                                   Lin = Hp*Wp + 1, phase p = 2*(row%2)+(col%2)
    # wdw_ref: (Cin, 16)          SMEM  depthwise weights, flat index kh*4 + kw
    # bdw_ref: (Cin,)             SMEM
    # wpw_ref: (Cout, Cin)        SMEM
    # bpw_ref: (Cout,)            SMEM
    # o_ref:   (nb, Cout, Lacc)   VMEM  Lacc = Ho*Wp; flat index j = oh*Wp + ow,
    #                                   the ow == Wo column is garbage (wrapper crops)
    nb, cin, _, lin = x_ref.shape
    _, cout, lacc = o_ref.shape
    shifts = (0, 1, wp, wp + 1)            # macro tap (ih, iw) -> flat lane shift

    # Hoist all SMEM scalar reads + bias broadcasts out of the batch loop.
    wdw = [[wdw_ref[c, t] for t in range(K * K)] for c in range(cin)]
    wpw = [[wpw_ref[co, c] for c in range(cin)] for co in range(cout)]
    bdw_vec = [jnp.full((lacc,), bdw_ref[c], dtype=jnp.float32) for c in range(cin)]
    bpw_vec = [jnp.full((lacc,), bpw_ref[co], dtype=jnp.float32) for co in range(cout)]

    # TODO(synk): once Cin/Cout/nb grow, replace these fully-unrolled Python loops
    # with lax.fori_loop(..., unroll=True) on the short inner loops.
    for b in range(nb):
        # Only Cout accumulators stay live (depthwise->pointwise fusion below).
        out_acc = [bpw_vec[co] for co in range(cout)]

        for c in range(cin):
            xc = x_ref[b, c]                           # (4, Lin): 4 phases on sublanes
            # 4 lane-shifted views of all 4 phase rows at once (one shift per macro tap).
            xs = [xc[:, s:s + lacc] for s in shifts]   # each (4, Lacc)

            # Depthwise 4x4 / stride-2 for this channel: 16 scalar*vreg FMAs on
            # lane-dense flat rows.
            dw = bdw_vec[c]
            for ih in range(2):
                for iw in range(2):
                    v = xs[2 * ih + iw]
                    for p in range(4):
                        ph, pw_ = p // 2, p % 2
                        w = wdw[c][(2 * ih + ph) * K + (2 * iw + pw_)]
                        dw = dw + w * v[p]

            # Fused pointwise 1x1: FMA this channel's depthwise result into every
            # output-channel accumulator, then drop it.
            # TODO(synk): for Cin,Cout >= ~32 switch to an MXU jnp.dot over a
            # (Cin, Lacc) VMEM scratch (wpw in VMEM) instead of scalar*vreg FMAs.
            for co in range(cout):
                out_acc[co] = out_acc[co] + wpw[co][c] * dw

        for co in range(cout):
            o_ref[b, co] = out_acc[co].astype(o_ref.dtype)


def _pick_batch_block(n, max_nb=8, min_steps=2):
    """Largest divisor of n (<= max_nb) that still leaves >= min_steps grid steps,
    so the pipeline has prefetch/writeback overlap and both v7x TCs get work."""
    for nb in range(min(n, max_nb), 0, -1):
        if n % nb == 0 and n // nb >= min_steps:
            return nb
    return 1


def depthwise_separable_conv(x_nchw, w_dw, b_dw, w_pw, b_pw):
    """x_nchw: (N, Cin, H, W); w_dw: (Cin, 1, 4, 4); b_dw: (Cin,);
       w_pw: (Cout, Cin, 1, 1); b_pw: (Cout,).  Returns (N, Cout, H//2, W//2)."""
    n, cin, h, w = x_nchw.shape
    cout = w_pw.shape[0]
    # Stride-2 phase fold requires even padded extents.
    # TODO(synk): PyTorch Conv2d(k=4,s=2,p=1) also accepts odd H/W; support via an
    # extra one-row/col pad if ever needed.
    assert (h + 2 * PAD) % 2 == 0 and (w + 2 * PAD) % 2 == 0, "H, W must be even"
    ho = (h + 2 * PAD - K) // STRIDE + 1
    wo = (w + 2 * PAD - K) // STRIDE + 1
    hp, wp = (h + 2 * PAD) // 2, (w + 2 * PAD) // 2
    assert hp == ho + 1 and wp == wo + 1

    lin = hp * wp + 1       # flat per-phase length (+1 so the (wp+1)-shift window fits)
    lacc = ho * wp          # flat output length; the ow == wo column is garbage

    # Pad by 1, fold the 4 stride-2 phases with a single transpose, then FLATTEN
    # spatial so the kernel's trailing (lane) axis is dense:
    # (N,Cin,Hp,2,Wp,2) -> (N,Cin,2,2,Hp,Wp) -> (N,Cin,4,Hp*Wp) -> pad lane axis by 1.
    x = x_nchw.astype(jnp.float32)
    x = jnp.pad(x, ((0, 0), (0, 0), (PAD, PAD), (PAD, PAD)))
    x = (x.reshape(n, cin, hp, 2, wp, 2)
           .transpose(0, 1, 3, 5, 2, 4)
           .reshape(n, cin, 4, hp * wp))
    x = jnp.pad(x, ((0, 0), (0, 0), (0, 0), (0, 1)))
    # TODO(synk): for large images on v7x, add a row-tiled spatial grid axis (1-row
    # halo in Hp) and keep a 2-D (Hp, Wp) layout once Wp >= 128 to fit 64 MiB VMEM.
    # TODO(synk): if xprof shows this wrapper fold on the critical path, move the
    # stride-2 split into the kernel (strided pl.ds rows + even/odd lane unzip).
    # TODO(synk): on v6e/v7x, load x as bf16 (accumulate f32) to halve HBM traffic;
    # keep f32 on v5e.

    wdw = w_dw.reshape(cin, K * K).astype(jnp.float32)   # [c, kh*4 + kw]
    bdw = b_dw.astype(jnp.float32)                       # (Cin,)
    wpw = w_pw.reshape(cout, cin).astype(jnp.float32)    # (Cout, Cin)
    bpw = b_pw.astype(jnp.float32)                       # (Cout,)

    nb = _pick_batch_block(n)
    smem_spec = pl.BlockSpec(memory_space=pltpu.MemorySpace.SMEM)

    out_flat = pl.pallas_call(
        functools.partial(_dwsep_kernel, wp=wp),
        out_shape=jax.ShapeDtypeStruct((n, cout, lacc), jnp.float32),
        grid=(n // nb,),
        in_specs=[
            pl.BlockSpec((nb, cin, 4, lin), lambda b: (b, 0, 0, 0)),
            smem_spec,   # depthwise weights (scalars)
            smem_spec,   # depthwise bias
            smem_spec,   # pointwise weights
            smem_spec,   # pointwise bias
        ],
        out_specs=pl.BlockSpec((nb, cout, lacc), lambda b: (b, 0, 0)),
        compiler_params=pltpu.CompilerParams(
            dimension_semantics=("parallel",),
            # Working set here is tiny; keep a cap that is safe on v7x (64 MiB VMEM).
            vmem_limit_bytes=32 * 1024 * 1024,
        ),
    )(x, wdw, bdw, wpw, bpw)

    # Drop the garbage column: in-kernel flat row stride is Wp, valid width is Wo.
    return out_flat.reshape(n, cout, ho, wp)[:, :, :, :wo]


def _reference(x, w_dw, b_dw, w_pw, b_pw):
    cin = x.shape[1]
    dw = lax.conv_general_dilated(
        x, w_dw, window_strides=(2, 2), padding=((1, 1), (1, 1)),
        feature_group_count=cin,
        dimension_numbers=("NCHW", "OIHW", "NCHW")) + b_dw[None, :, None, None]
    pw = lax.conv_general_dilated(
        dw, w_pw, window_strides=(1, 1), padding=((0, 0), (0, 0)),
        dimension_numbers=("NCHW", "OIHW", "NCHW")) + b_pw[None, :, None, None]
    return pw


if __name__ == "__main__":
    key = jax.random.PRNGKey(0)
    kx, k1, k2, k3, k4 = jax.random.split(key, 5)
    N, CIN, COUT, H, W = 2, 4, 8, 16, 16

    x = jax.random.normal(kx, (N, CIN, H, W), dtype=jnp.float32)
    w_dw = 0.1 * jax.random.normal(k1, (CIN, 1, K, K), dtype=jnp.float32)
    b_dw = 0.1 * jax.random.normal(k2, (CIN,), dtype=jnp.float32)
    w_pw = 0.1 * jax.random.normal(k3, (COUT, CIN, 1, 1), dtype=jnp.float32)
    b_pw = 0.1 * jax.random.normal(k4, (COUT,), dtype=jnp.float32)

    out = depthwise_separable_conv(x, w_dw, b_dw, w_pw, b_pw)
    out = jax.block_until_ready(out)

    ref = _reference(x, w_dw, b_dw, w_pw, b_pw)
    assert out.shape == (N, COUT, H // 2, W // 2), out.shape
    assert jnp.allclose(out, ref, atol=1e-4, rtol=1e-4), float(jnp.max(jnp.abs(out - ref)))
    print("KERNEL_OK")
</pallas_src>

<mosaic_0001>
module attributes {stable_mosaic.version = 11 : i64} {
  func.func @_dwsep_kernel(%arg0: i32, %arg1: memref<1x4x4x82xf32, #tpu.memory_space<vmem>>, %arg2: memref<4x16xf32, #tpu.memory_space<smem>>, %arg3: memref<4xf32, #tpu.memory_space<smem>>, %arg4: memref<8x4xf32, #tpu.memory_space<smem>>, %arg5: memref<8xf32, #tpu.memory_space<smem>>, %arg6: memref<1x8x72xf32, #tpu.memory_space<vmem>>) attributes {dimension_semantics = [#tpu.dimension_semantics<parallel>], iteration_bounds = array<i64: 2>, scalar_prefetch = 0 : i64, scratch_operands = 0 : i64, tpu.core_type = #tpu.core_type<tc>, window_params = [{transform_indices = @transform_0, window_bounds = array<i64: 1, 4, 4, 82>}, {transform_indices = @transform_1, window_bounds = array<i64: 4, 16>}, {transform_indices = @transform_2, window_bounds = array<i64: 4>}, {transform_indices = @transform_3, window_bounds = array<i64: 8, 4>}, {transform_indices = @transform_4, window_bounds = array<i64: 8>}, {transform_indices = @transform_5, window_bounds = array<i64: 1, 8, 72>}]} {
    %c0 = arith.constant 0 : index
    %c0_0 = arith.constant 0 : index
    %0 = memref.load %arg2[%c0, %c0_0] : memref<4x16xf32, #tpu.memory_space<smem>>
    %c0_1 = arith.constant 0 : index
    %c1 = arith.constant 1 : index
    %1 = memref.load %arg2[%c0_1, %c1] : memref<4x16xf32, #tpu.memory_space<smem>>
    %c0_2 = arith.constant 0 : index
    %c2 = arith.constant 2 : index
    %2 = memref.load %arg2[%c0_2, %c2] : memref<4x16xf32, #tpu.memory_space<smem>>
    %c0_3 = arith.constant 0 : index
    %c3 = arith.constant 3 : index
    %3 = memref.load %arg2[%c0_3, %c3] : memref<4x16xf32, #tpu.memory_space<smem>>
    %c0_4 = arith.constant 0 : index
    %c4 = arith.constant 4 : index
    %4 = memref.load %arg2[%c0_4, %c4] : memref<4x16xf32, #tpu.memory_space<smem>>
    %c0_5 = arith.constant 0 : index
    %c5 = arith.constant 5 : index
    %5 = memref.load %arg2[%c0_5, %c5] : memref<4x16xf32, #tpu.memory_space<smem>>
    %c0_6 = arith.constant 0 : index
    %c6 = arith.constant 6 : index
    %6 = memref.load %arg2[%c0_6, %c6] : memref<4x16xf32, #tpu.memory_space<smem>>
    %c0_7 = arith.constant 0 : index
    %c7 = arith.constant 7 : index
    %7 = memref.load %arg2[%c0_7, %c7] : memref<4x16xf32, #tpu.memory_space<smem>>
    %c0_8 = arith.constant 0 : index
    %c8 = arith.constant 8 : index
    %8 = memref.load %arg2[%c0_8, %c8] : memref<4x16xf32, #tpu.memory_space<smem>>
    %c0_9 = arith.constant 0 : index
    %c9 = arith.constant 9 : index
    %9 = memref.load %arg2[%c0_9, %c9] : memref<4x16xf32, #tpu.memory_space<smem>>
    %c0_10 = arith.constant 0 : index
    %c10 = arith.constant 10 : index
    %10 = memref.load %arg2[%c0_10, %c10] : memref<4x16xf32, #tpu.memory_space<smem>>
    %c0_11 = arith.constant 0 : index
    %c11 = arith.constant 11 : index
    %11 = memref.load %arg2[%c0_11, %c11] : memref<4x16xf32, #tpu.memory_space<smem>>
    %c0_12 = arith.constant 0 : index
    %c12 = arith.constant 12 : index
    %12 = memref.load %arg2[%c0_12, %c12] : memref<4x16xf32, #tpu.memory_space<smem>>
    %c0_13 = arith.constant 0 : index
    %c13 = arith.constant 13 : index
    %13 = memref.load %arg2[%c0_13, %c13] : memref<4x16xf32, #tpu.memory_space<smem>>
    %c0_14 = arith.constant 0 : index
    %c14 = arith.constant 14 : index
    %14 = memref.load %arg2[%c0_14, %c14] : memref<4x16xf32, #tpu.memory_space<smem>>
    %c0_15 = arith.constant 0 : index
    %c15 = arith.constant 15 : index
    %15 = memref.load %arg2[%c0_15, %c15] : memref<4x16xf32, #tpu.memory_space<smem>>
    %c1_16 = arith.constant 1 : index
    %c0_17 = arith.constant 0 : index
    %16 = memref.load %arg2[%c1_16, %c0_17] : memref<4x16xf32, #tpu.memory_space<smem>>
    %c1_18 = arith.constant 1 : index
    %c1_19 = arith.constant 1 : index
    %17 = memref.load %arg2[%c1_18, %c1_19] : memref<4x16xf32, #tpu.memory_space<smem>>
    %c1_20 = arith.constant 1 : index
    %c2_21 = arith.constant 2 : index
    %18 = memref.load %arg2[%c1_20, %c2_21] : memref<4x16xf32, #tpu.memory_space<smem>>
    %c1_22 = arith.constant 1 : index
    %c3_23 = arith.constant 3 : index
    %19 = memref.load %arg2[%c1_22, %c3_23] : memref<4x16xf32, #tpu.memory_space<smem>>
    %c1_24 = arith.constant 1 : index
    %c4_25 = arith.constant 4 : index
    %20 = memref.load %arg2[%c1_24, %c4_25] : memref<4x16xf32, #tpu.memory_space<smem>>
    %c1_26 = arith.constant 1 : index
    %c5_27 = arith.constant 5 : index
    %21 = memref.load %arg2[%c1_26, %c5_27] : memref<4x16xf32, #tpu.memory_space<smem>>
    %c1_28 = arith.constant 1 : index
    %c6_29 = arith.constant 6 : index
    %22 = memref.load %arg2[%c1_28, %c6_29] : memref<4x16xf32, #tpu.memory_space<smem>>
    %c1_30 = arith.constant 1 : index
    %c7_31 = arith.constant 7 : index
    %23 = memref.load %arg2[%c1_30, %c7_31] : memref<4x16xf32, #tpu.memory_space<smem>>
    %c1_32 = arith.constant 1 : index
    %c8_33 = arith.constant 8 : index
    %24 = memref.load %arg2[%c1_32, %c8_33] : memref<4x16xf32, #tpu.memory_space<smem>>
    %c1_34 = arith.constant 1 : index
    %c9_35 = arith.constant 9 : index
    %25 = memref.load %arg2[%c1_34, %c9_35] : memref<4x16xf32, #tpu.memory_space<smem>>
    %c1_36 = arith.constant 1 : index
    %c10_37 = arith.constant 10 : index
    %26 = memref.load %arg2[%c1_36, %c10_37] : memref<4x16xf32, #tpu.memory_space<smem>>
    %c1_38 = arith.constant 1 : index
    %c11_39 = arith.constant 11 : index
    %27 = memref.load %arg2[%c1_38, %c11_39] : memref<4x16xf32, #tpu.memory_space<smem>>
    %c1_40 = arith.constant 1 : index
    %c12_41 = arith.constant 12 : index
    %28 = memref.load %arg2[%c1_40, %c12_41] : memref<4x16xf32, #tpu.memory_space<smem>>
    %c1_42 = arith.constant 1 : index
    %c13_43 = arith.constant 13 : index
    %29 = memref.load %arg2[%c1_42, %c13_43] : memref<4x16xf32, #tpu.memory_space<smem>>
    %c1_44 = arith.constant 1 : index
    %c14_45 = arith.constant 14 : index
    %30 = memref.load %arg2[%c1_44, %c14_45] : memref<4x16xf32, #tpu.memory_space<smem>>
    %c1_46 = arith.constant 1 : index
    %c15_47 = arith.constant 15 : index
    %31 = memref.load %arg2[%c1_46, %c15_47] : memref<4x16xf32, #tpu.memory_space<smem>>
    %c2_48 = arith.constant 2 : index
    %c0_49 = arith.constant 0 : index
    %32 = memref.load %arg2[%c2_48, %c0_49] : memref<4x16xf32, #tpu.memory_space<smem>>
    %c2_50 = arith.constant 2 : index
    %c1_51 = arith.constant 1 : index
    %33 = memref.load %arg2[%c2_50, %c1_51] : memref<4x16xf32, #tpu.memory_space<smem>>
    %c2_52 = arith.constant 2 : index
    %c2_53 = arith.constant 2 : index
    %34 = memref.load %arg2[%c2_52, %c2_53] : memref<4x16xf32, #tpu.memory_space<smem>>
    %c2_54 = arith.constant 2 : index
    %c3_55 = arith.constant 3 : index
    %35 = memref.load %arg2[%c2_54, %c3_55] : memref<4x16xf32, #tpu.memory_space<smem>>
    %c2_56 = arith.constant 2 : index
    %c4_57 = arith.constant 4 : index
    %36 = memref.load %arg2[%c2_56, %c4_57] : memref<4x16xf32, #tpu.memory_space<smem>>
    %c2_58 = arith.constant 2 : index
    %c5_59 = arith.constant 5 : index
    %37 = memref.load %arg2[%c2_58, %c5_59] : memref<4x16xf32, #tpu.memory_space<smem>>
    %c2_60 = arith.constant 2 : index
    %c6_61 = arith.constant 6 : index
    %38 = memref.load %arg2[%c2_60, %c6_61] : memref<4x16xf32, #tpu.memory_space<smem>>
    %c2_62 = arith.constant 2 : index
    %c7_63 = arith.constant 7 : index
    %39 = memref.load %arg2[%c2_62, %c7_63] : memref<4x16xf32, #tpu.memory_space<smem>>
    %c2_64 = arith.constant 2 : index
    %c8_65 = arith.constant 8 : index
    %40 = memref.load %arg2[%c2_64, %c8_65] : memref<4x16xf32, #tpu.memory_space<smem>>
    %c2_66 = arith.constant 2 : index
    %c9_67 = arith.constant 9 : index
    %41 = memref.load %arg2[%c2_66, %c9_67] : memref<4x16xf32, #tpu.memory_space<smem>>
    %c2_68 = arith.constant 2 : index
    %c10_69 = arith.constant 10 : index
    %42 = memref.load %arg2[%c2_68, %c10_69] : memref<4x16xf32, #tpu.memory_space<smem>>
    %c2_70 = arith.constant 2 : index
    %c11_71 = arith.constant 11 : index
    %43 = memref.load %arg2[%c2_70, %c11_71] : memref<4x16xf32, #tpu.memory_space<smem>>
    %c2_72 = arith.constant 2 : index
    %c12_73 = arith.constant 12 : index
    %44 = memref.load %arg2[%c2_72, %c12_73] : memref<4x16xf32, #tpu.memory_space<smem>>
    %c2_74 = arith.constant 2 : index
    %c13_75 = arith.constant 13 : index
    %45 = memref.load %arg2[%c2_74, %c13_75] : memref<4x16xf32, #tpu.memory_space<smem>>
    %c2_76 = arith.constant 2 : index
    %c14_77 = arith.constant 14 : index
    %46 = memref.load %arg2[%c2_76, %c14_77] : memref<4x16xf32, #tpu.memory_space<smem>>
    %c2_78 = arith.constant 2 : index
    %c15_79 = arith.constant 15 : index
    %47 = memref.load %arg2[%c2_78, %c15_79] : memref<4x16xf32, #tpu.memory_space<smem>>
    %c3_80 = arith.constant 3 : index
    %c0_81 = arith.constant 0 : index
    %48 = memref.load %arg2[%c3_80, %c0_81] : memref<4x16xf32, #tpu.memory_space<smem>>
    %c3_82 = arith.constant 3 : index
    %c1_83 = arith.constant 1 : index
    %49 = memref.load %arg2[%c3_82, %c1_83] : memref<4x16xf32, #tpu.memory_space<smem>>
    %c3_84 = arith.constant 3 : index
    %c2_85 = arith.constant 2 : index
    %50 = memref.load %arg2[%c3_84, %c2_85] : memref<4x16xf32, #tpu.memory_space<smem>>
    %c3_86 = arith.constant 3 : index
    %c3_87 = arith.constant 3 : index
    %51 = memref.load %arg2[%c3_86, %c3_87] : memref<4x16xf32, #tpu.memory_space<smem>>
    %c3_88 = arith.constant 3 : index
    %c4_89 = arith.constant 4 : index
    %52 = memref.load %arg2[%c3_88, %c4_89] : memref<4x16xf32, #tpu.memory_space<smem>>
    %c3_90 = arith.constant 3 : index
    %c5_91 = arith.constant 5 : index
    %53 = memref.load %arg2[%c3_90, %c5_91] : memref<4x16xf32, #tpu.memory_space<smem>>
    %c3_92 = arith.constant 3 : index
    %c6_93 = arith.constant 6 : index
    %54 = memref.load %arg2[%c3_92, %c6_93] : memref<4x16xf32, #tpu.memory_space<smem>>
    %c3_94 = arith.constant 3 : index
    %c7_95 = arith.constant 7 : index
    %55 = memref.load %arg2[%c3_94, %c7_95] : memref<4x16xf32, #tpu.memory_space<smem>>
    %c3_96 = arith.constant 3 : index
    %c8_97 = arith.constant 8 : index
    %56 = memref.load %arg2[%c3_96, %c8_97] : memref<4x16xf32, #tpu.memory_space<smem>>
    %c3_98 = arith.constant 3 : index
    %c9_99 = arith.constant 9 : index
    %57 = memref.load %arg2[%c3_98, %c9_99] : memref<4x16xf32, #tpu.memory_space<smem>>
    %c3_100 = arith.constant 3 : index
    %c10_101 = arith.constant 10 : index
    %58 = memref.load %arg2[%c3_100, %c10_101] : memref<4x16xf32, #tpu.memory_space<smem>>
    %c3_102 = arith.constant 3 : index
    %c11_103 = arith.constant 11 : index
    %59 = memref.load %arg2[%c3_102, %c11_103] : memref<4x16xf32, #tpu.memory_space<smem>>
    %c3_104 = arith.constant 3 : index
    %c12_105 = arith.constant 12 : index
    %60 = memref.load %arg2[%c3_104, %c12_105] : memref<4x16xf32, #tpu.memory_space<smem>>
    %c3_106 = arith.constant 3 : index
    %c13_107 = arith.constant 13 : index
    %61 = memref.load %arg2[%c3_106, %c13_107] : memref<4x16xf32, #tpu.memory_space<smem>>
    %c3_108 = arith.constant 3 : index
    %c14_109 = arith.constant 14 : index
    %62 = memref.load %arg2[%c3_108, %c14_109] : memref<4x16xf32, #tpu.memory_space<smem>>
    %c3_110 = arith.constant 3 : index
    %c15_111 = arith.constant 15 : index
    %63 = memref.load %arg2[%c3_110, %c15_111] : memref<4x16xf32, #tpu.memory_space<smem>>
    %c0_112 = arith.constant 0 : index
    %c0_113 = arith.constant 0 : index
    %64 = memref.load %arg4[%c0_112, %c0_113] : memref<8x4xf32, #tpu.memory_space<smem>>
    %c0_114 = arith.constant 0 : index
    %c1_115 = arith.constant 1 : index
    %65 = memref.load %arg4[%c0_114, %c1_115] : memref<8x4xf32, #tpu.memory_space<smem>>
    %c0_116 = arith.constant 0 : index
    %c2_117 = arith.constant 2 : index
    %66 = memref.load %arg4[%c0_116, %c2_117] : memref<8x4xf32, #tpu.memory_space<smem>>
    %c0_118 = arith.constant 0 : index
    %c3_119 = arith.constant 3 : index
    %67 = memref.load %arg4[%c0_118, %c3_119] : memref<8x4xf32, #tpu.memory_space<smem>>
    %c1_120 = arith.constant 1 : index
    %c0_121 = arith.constant 0 : index
    %68 = memref.load %arg4[%c1_120, %c0_121] : memref<8x4xf32, #tpu.memory_space<smem>>
    %c1_122 = arith.constant 1 : index
    %c1_123 = arith.constant 1 : index
    %69 = memref.load %arg4[%c1_122, %c1_123] : memref<8x4xf32, #tpu.memory_space<smem>>
    %c1_124 = arith.constant 1 : index
    %c2_125 = arith.constant 2 : index
    %70 = memref.load %arg4[%c1_124, %c2_125] : memref<8x4xf32, #tpu.memory_space<smem>>
    %c1_126 = arith.constant 1 : index
    %c3_127 = arith.constant 3 : index
    %71 = memref.load %arg4[%c1_126, %c3_127] : memref<8x4xf32, #tpu.memory_space<smem>>
    %c2_128 = arith.constant 2 : index
    %c0_129 = arith.constant 0 : index
    %72 = memref.load %arg4[%c2_128, %c0_129] : memref<8x4xf32, #tpu.memory_space<smem>>
    %c2_130 = arith.constant 2 : index
    %c1_131 = arith.constant 1 : index
    %73 = memref.load %arg4[%c2_130, %c1_131] : memref<8x4xf32, #tpu.memory_space<smem>>
    %c2_132 = arith.constant 2 : index
    %c2_133 = arith.constant 2 : index
    %74 = memref.load %arg4[%c2_132, %c2_133] : memref<8x4xf32, #tpu.memory_space<smem>>
    %c2_134 = arith.constant 2 : index
    %c3_135 = arith.constant 3 : index
    %75 = memref.load %arg4[%c2_134, %c3_135] : memref<8x4xf32, #tpu.memory_space<smem>>
    %c3_136 = arith.constant 3 : index
    %c0_137 = arith.constant 0 : index
    %76 = memref.load %arg4[%c3_136, %c0_137] : memref<8x4xf32, #tpu.memory_space<smem>>
    %c3_138 = arith.constant 3 : index
    %c1_139 = arith.constant 1 : index
    %77 = memref.load %arg4[%c3_138, %c1_139] : memref<8x4xf32, #tpu.memory_space<smem>>
    %c3_140 = arith.constant 3 : index
    %c2_141 = arith.constant 2 : index
    %78 = memref.load %arg4[%c3_140, %c2_141] : memref<8x4xf32, #tpu.memory_space<smem>>
    %c3_142 = arith.constant 3 : index
    %c3_143 = arith.constant 3 : index
    %79 = memref.load %arg4[%c3_142, %c3_143] : memref<8x4xf32, #tpu.memory_space<smem>>
    %c4_144 = arith.constant 4 : index
    %c0_145 = arith.constant 0 : index
    %80 = memref.load %arg4[%c4_144, %c0_145] : memref<8x4xf32, #tpu.memory_space<smem>>
    %c4_146 = arith.constant 4 : index
    %c1_147 = arith.constant 1 : index
    %81 = memref.load %arg4[%c4_146, %c1_147] : memref<8x4xf32, #tpu.memory_space<smem>>
    %c4_148 = arith.constant 4 : index
    %c2_149 = arith.constant 2 : index
    %82 = memref.load %arg4[%c4_148, %c2_149] : memref<8x4xf32, #tpu.memory_space<smem>>
    %c4_150 = arith.constant 4 : index
    %c3_151 = arith.constant 3 : index
    %83 = memref.load %arg4[%c4_150, %c3_151] : memref<8x4xf32, #tpu.memory_space<smem>>
    %c5_152 = arith.constant 5 : index
    %c0_153 = arith.constant 0 : index
    %84 = memref.load %arg4[%c5_152, %c0_153] : memref<8x4xf32, #tpu.memory_space<smem>>
    %c5_154 = arith.constant 5 : index
    %c1_155 = arith.constant 1 : index
    %85 = memref.load %arg4[%c5_154, %c1_155] : memref<8x4xf32, #tpu.memory_space<smem>>
    %c5_156 = arith.constant 5 : index
    %c2_157 = arith.constant 2 : index
    %86 = memref.load %arg4[%c5_156, %c2_157] : memref<8x4xf32, #tpu.memory_space<smem>>
    %c5_158 = arith.constant 5 : index
    %c3_159 = arith.constant 3 : index
    %87 = memref.load %arg4[%c5_158, %c3_159] : memref<8x4xf32, #tpu.memory_space<smem>>
    %c6_160 = arith.constant 6 : index
    %c0_161 = arith.constant 0 : index
    %88 = memref.load %arg4[%c6_160, %c0_161] : memref<8x4xf32, #tpu.memory_space<smem>>
    %c6_162 = arith.constant 6 : index
    %c1_163 = arith.constant 1 : index
    %89 = memref.load %arg4[%c6_162, %c1_163] : memref<8x4xf32, #tpu.memory_space<smem>>
    %c6_164 = arith.constant 6 : index
    %c2_165 = arith.constant 2 : index
    %90 = memref.load %arg4[%c6_164, %c2_165] : memref<8x4xf32, #tpu.memory_space<smem>>
    %c6_166 = arith.constant 6 : index
    %c3_167 = arith.constant 3 : index
    %91 = memref.load %arg4[%c6_166, %c3_167] : memref<8x4xf32, #tpu.memory_space<smem>>
    %c7_168 = arith.constant 7 : index
    %c0_169 = arith.constant 0 : index
    %92 = memref.load %arg4[%c7_168, %c0_169] : memref<8x4xf32, #tpu.memory_space<smem>>
    %c7_170 = arith.constant 7 : index
    %c1_171 = arith.constant 1 : index
    %93 = memref.load %arg4[%c7_170, %c1_171] : memref<8x4xf32, #tpu.memory_space<smem>>
    %c7_172 = arith.constant 7 : index
    %c2_173 = arith.constant 2 : index
    %94 = memref.load %arg4[%c7_172, %c2_173] : memref<8x4xf32, #tpu.memory_space<smem>>
    %c7_174 = arith.constant 7 : index
    %c3_175 = arith.constant 3 : index
    %95 = memref.load %arg4[%c7_174, %c3_175] : memref<8x4xf32, #tpu.memory_space<smem>>
    %c0_176 = arith.constant 0 : index
    %96 = memref.load %arg3[%c0_176] : memref<4xf32, #tpu.memory_space<smem>>
    %97 = vector.broadcast %96 : f32 to vector<72xf32>
    %c1_177 = arith.constant 1 : index
    %98 = memref.load %arg3[%c1_177] : memref<4xf32, #tpu.memory_space<smem>>
    %99 = vector.broadcast %98 : f32 to vector<72xf32>
    %c2_178 = arith.constant 2 : index
    %100 = memref.load %arg3[%c2_178] : memref<4xf32, #tpu.memory_space<smem>>
    %101 = vector.broadcast %100 : f32 to vector<72xf32>
    %c3_179 = arith.constant 3 : index
    %102 = memref.load %arg3[%c3_179] : memref<4xf32, #tpu.memory_space<smem>>
    %103 = vector.broadcast %102 : f32 to vector<72xf32>
    %c0_180 = arith.constant 0 : index
    %104 = memref.load %arg5[%c0_180] : memref<8xf32, #tpu.memory_space<smem>>
    %105 = vector.broadcast %104 : f32 to vector<72xf32>
    %c1_181 = arith.constant 1 : index
    %106 = memref.load %arg5[%c1_181] : memref<8xf32, #tpu.memory_space<smem>>
    %107 = vector.broadcast %106 : f32 to vector<72xf32>
    %c2_182 = arith.constant 2 : index
    %108 = memref.load %arg5[%c2_182] : memref<8xf32, #tpu.memory_space<smem>>
    %109 = vector.broadcast %108 : f32 to vector<72xf32>
    %c3_183 = arith.constant 3 : index
    %110 = memref.load %arg5[%c3_183] : memref<8xf32, #tpu.memory_space<smem>>
    %111 = vector.broadcast %110 : f32 to vector<72xf32>
    %c4_184 = arith.constant 4 : index
    %112 = memref.load %arg5[%c4_184] : memref<8xf32, #tpu.memory_space<smem>>
    %113 = vector.broadcast %112 : f32 to vector<72xf32>
    %c5_185 = arith.constant 5 : index
    %114 = memref.load %arg5[%c5_185] : memref<8xf32, #tpu.memory_space<smem>>
    %115 = vector.broadcast %114 : f32 to vector<72xf32>
    %c6_186 = arith.constant 6 : index
    %116 = memref.load %arg5[%c6_186] : memref<8xf32, #tpu.memory_space<smem>>
    %117 = vector.broadcast %116 : f32 to vector<72xf32>
    %c7_187 = arith.constant 7 : index
    %118 = memref.load %arg5[%c7_187] : memref<8xf32, #tpu.memory_space<smem>>
    %119 = vector.broadcast %118 : f32 to vector<72xf32>
    %c0_188 = arith.constant 0 : index
    %c0_189 = arith.constant 0 : index
    %c0_190 = arith.constant 0 : index
    %c0_191 = arith.constant 0 : index
    %120 = vector.load %arg1[%c0_188, %c0_189, %c0_190, %c0_191] : memref<1x4x4x82xf32, #tpu.memory_space<vmem>>, vector<1x1x4x82xf32>
    %121 = vector.shape_cast %120 : vector<1x1x4x82xf32> to vector<4x82xf32>
    %122 = vector.extract_strided_slice %121 {offsets = [0, 0], sizes = [4, 72], strides = [1, 1]} : vector<4x82xf32> to vector<4x72xf32>
    %123 = vector.extract_strided_slice %121 {offsets = [0, 1], sizes = [4, 72], strides = [1, 1]} : vector<4x82xf32> to vector<4x72xf32>
    %124 = vector.extract_strided_slice %121 {offsets = [0, 9], sizes = [4, 72], strides = [1, 1]} : vector<4x82xf32> to vector<4x72xf32>
    %125 = vector.extract_strided_slice %121 {offsets = [0, 10], sizes = [4, 72], strides = [1, 1]} : vector<4x82xf32> to vector<4x72xf32>
    %126 = vector.extract_strided_slice %122 {offsets = [0, 0], sizes = [1, 72], strides = [1, 1]} : vector<4x72xf32> to vector<1x72xf32>
    %127 = vector.shape_cast %126 : vector<1x72xf32> to vector<72xf32>
    %128 = vector.broadcast %0 : f32 to vector<72xf32>
    %129 = arith.mulf %128, %127 : vector<72xf32>
    %130 = arith.addf %97, %129 : vector<72xf32>
    %131 = vector.extract_strided_slice %122 {offsets = [1, 0], sizes = [1, 72], strides = [1, 1]} : vector<4x72xf32> to vector<1x72xf32>
    %132 = vector.shape_cast %131 : vector<1x72xf32> to vector<72xf32>
    %133 = vector.broadcast %1 : f32 to vector<72xf32>
    %134 = arith.mulf %133, %132 : vector<72xf32>
    %135 = arith.addf %130, %134 : vector<72xf32>
    %136 = vector.extract_strided_slice %122 {offsets = [2, 0], sizes = [1, 72], strides = [1, 1]} : vector<4x72xf32> to vector<1x72xf32>
    %137 = vector.shape_cast %136 : vector<1x72xf32> to vector<72xf32>
    %138 = vector.broadcast %4 : f32 to vector<72xf32>
    %139 = arith.mulf %138, %137 : vector<72xf32>
    %140 = arith.addf %135, %139 : vector<72xf32>
    %141 = vector.extract_strided_slice %122 {offsets = [3, 0], sizes = [1, 72], strides = [1, 1]} : vector<4x72xf32> to vector<1x72xf32>
    %142 = vector.shape_cast %141 : vector<1x72xf32> to vector<72xf32>
    %143 = vector.broadcast %5 : f32 to vector<72xf32>
    %144 = arith.mulf %143, %142 : vector<72xf32>
    %145 = arith.addf %140, %144 : vector<72xf32>
    %146 = vector.extract_strided_slice %123 {offsets = [0, 0], sizes = [1, 72], strides = [1, 1]} : vector<4x72xf32> to vector<1x72xf32>
    %147 = vector.shape_cast %146 : vector<1x72xf32> to vector<72xf32>
    %148 = vector.broadcast %2 : f32 to vector<72xf32>
    %149 = arith.mulf %148, %147 : vector<72xf32>
    %150 = arith.addf %145, %149 : vector<72xf32>
    %151 = vector.extract_strided_slice %123 {offsets = [1, 0], sizes = [1, 72], strides = [1, 1]} : vector<4x72xf32> to vector<1x72xf32>
    %152 = vector.shape_cast %151 : vector<1x72xf32> to vector<72xf32>
    %153 = vector.broadcast %3 : f32 to vector<72xf32>
    %154 = arith.mulf %153, %152 : vector<72xf32>
    %155 = arith.addf %150, %154 : vector<72xf32>
    %156 = vector.extract_strided_slice %123 {offsets = [2, 0], sizes = [1, 72], strides = [1, 1]} : vector<4x72xf32> to vector<1x72xf32>
    %157 = vector.shape_cast %156 : vector<1x72xf32> to vector<72xf32>
    %158 = vector.broadcast %6 : f32 to vector<72xf32>
    %159 = arith.mulf %158, %157 : vector<72xf32>
    %160 = arith.addf %155, %159 : vector<72xf32>
    %161 = vector.extract_strided_slice %123 {offsets = [3, 0], sizes = [1, 72], strides = [1, 1]} : vector<4x72xf32> to vector<1x72xf32>
    %162 = vector.shape_cast %161 : vector<1x72xf32> to vector<72xf32>
    %163 = vector.broadcast %7 : f32 to vector<72xf32>
    %164 = arith.mulf %163, %162 : vector<72xf32>
    %165 = arith.addf %160, %164 : vector<72xf32>
    %166 = vector.extract_strided_slice %124 {offsets = [0, 0], sizes = [1, 72], strides = [1, 1]} : vector<4x72xf32> to vector<1x72xf32>
    %167 = vector.shape_cast %166 : vector<1x72xf32> to vector<72xf32>
    %168 = vector.broadcast %8 : f32 to vector<72xf32>
    %169 = arith.mulf %168, %167 : vector<72xf32>
    %170 = arith.addf %165, %169 : vector<72xf32>
    %171 = vector.extract_strided_slice %124 {offsets = [1, 0], sizes = [1, 72], strides = [1, 1]} : vector<4x72xf32> to vector<1x72xf32>
    %172 = vector.shape_cast %171 : vector<1x72xf32> to vector<72xf32>
    %173 = vector.broadcast %9 : f32 to vector<72xf32>
    %174 = arith.mulf %173, %172 : vector<72xf32>
    %175 = arith.addf %170, %174 : vector<72xf32>
    %176 = vector.extract_strided_slice %124 {offsets = [2, 0], sizes = [1, 72], strides = [1, 1]} : vector<4x72xf32> to vector<1x72xf32>
    %177 = vector.shape_cast %176 : vector<1x72xf32> to vector<72xf32>
    %178 = vector.broadcast %12 : f32 to vector<72xf32>
    %179 = arith.mulf %178, %177 : vector<72xf32>
    %180 = arith.addf %175, %179 : vector<72xf32>
    %181 = vector.extract_strided_slice %124 {offsets = [3, 0], sizes = [1, 72], strides = [1, 1]} : vector<4x72xf32> to vector<1x72xf32>
    %182 = vector.shape_cast %181 : vector<1x72xf32> to vector<72xf32>
    %183 = vector.broadcast %13 : f32 to vector<72xf32>
    %184 = arith.mulf %183, %182 : vector<72xf32>
    %185 = arith.addf %180, %184 : vector<72xf32>
    %186 = vector.extract_strided_slice %125 {offsets = [0, 0], sizes = [1, 72], strides = [1, 1]} : vector<4x72xf32> to vector<1x72xf32>
    %187 = vector.shape_cast %186 : vector<1x72xf32> to vector<72xf32>
    %188 = vector.broadcast %10 : f32 to vector<72xf32>
    %189 = arith.mulf %188, %187 : vector<72xf32>
    %190 = arith.addf %185, %189 : vector<72xf32>
    %191 = vector.extract_strided_slice %125 {offsets = [1, 0], sizes = [1, 72], strides = [1, 1]} : vector<4x72xf32> to vector<1x72xf32>
    %192 = vector.shape_cast %191 : vector<1x72xf32> to vector<72xf32>
    %193 = vector.broadcast %11 : f32 to vector<72xf32>
    %194 = arith.mulf %193, %192 : vector<72xf32>
    %195 = arith.addf %190, %194 : vector<72xf32>
    %196 = vector.extract_strided_slice %125 {offsets = [2, 0], sizes = [1, 72], strides = [1, 1]} : vector<4x72xf32> to vector<1x72xf32>
    %197 = vector.shape_cast %196 : vector<1x72xf32> to vector<72xf32>
    %198 = vector.broadcast %14 : f32 to vector<72xf32>
    %199 = arith.mulf %198, %197 : vector<72xf32>
    %200 = arith.addf %195, %199 : vector<72xf32>
    %201 = vector.extract_strided_slice %125 {offsets = [3, 0], sizes = [1, 72], strides = [1, 1]} : vector<4x72xf32> to vector<1x72xf32>
    %202 = vector.shape_cast %201 : vector<1x72xf32> to vector<72xf32>
    %203 = vector.broadcast %15 : f32 to vector<72xf32>
    %204 = arith.mulf %203, %202 : vector<72xf32>
    %205 = arith.addf %200, %204 : vector<72xf32>
    %206 = vector.broadcast %64 : f32 to vector<72xf32>
    %207 = arith.mulf %206, %205 : vector<72xf32>
    %208 = arith.addf %105, %207 : vector<72xf32>
    %209 = vector.broadcast %68 : f32 to vector<72xf32>
    %210 = arith.mulf %209, %205 : vector<72xf32>
    %211 = arith.addf %107, %210 : vector<72xf32>
    %212 = vector.broadcast %72 : f32 to vector<72xf32>
    %213 = arith.mulf %212, %205 : vector<72xf32>
    %214 = arith.addf %109, %213 : vector<72xf32>
    %215 = vector.broadcast %76 : f32 to vector<72xf32>
    %216 = arith.mulf %215, %205 : vector<72xf32>
    %217 = arith.addf %111, %216 : vector<72xf32>
    %218 = vector.broadcast %80 : f32 to vector<72xf32>
    %219 = arith.mulf %218, %205 : vector<72xf32>
    %220 = arith.addf %113, %219 : vector<72xf32>
    %221 = vector.broadcast %84 : f32 to vector<72xf32>
    %222 = arith.mulf %221, %205 : vector<72xf32>
    %223 = arith.addf %115, %222 : vector<72xf32>
    %224 = vector.broadcast %88 : f32 to vector<72xf32>
    %225 = arith.mulf %224, %205 : vector<72xf32>
    %226 = arith.addf %117, %225 : vector<72xf32>
    %227 = vector.broadcast %92 : f32 to vector<72xf32>
    %228 = arith.mulf %227, %205 : vector<72xf32>
    %229 = arith.addf %119, %228 : vector<72xf32>
    %c0_192 = arith.constant 0 : index
    %c1_193 = arith.constant 1 : index
    %c0_194 = arith.constant 0 : index
    %c0_195 = arith.constant 0 : index
    %230 = vector.load %arg1[%c0_192, %c1_193, %c0_194, %c0_195] : memref<1x4x4x82xf32, #tpu.memory_space<vmem>>, vector<1x1x4x82xf32>
    %231 = vector.shape_cast %230 : vector<1x1x4x82xf32> to vector<4x82xf32>
    %232 = vector.extract_strided_slice %231 {offsets = [0, 0], sizes = [4, 72], strides = [1, 1]} : vector<4x82xf32> to vector<4x72xf32>
    %233 = vector.extract_strided_slice %231 {offsets = [0, 1], sizes = [4, 72], strides = [1, 1]} : vector<4x82xf32> to vector<4x72xf32>
    %234 = vector.extract_strided_slice %231 {offsets = [0, 9], sizes = [4, 72], strides = [1, 1]} : vector<4x82xf32> to vector<4x72xf32>
    %235 = vector.extract_strided_slice %231 {offsets = [0, 10], sizes = [4, 72], strides = [1, 1]} : vector<4x82xf32> to vector<4x72xf32>
    %236 = vector.extract_strided_slice %232 {offsets = [0, 0], sizes = [1, 72], strides = [1, 1]} : vector<4x72xf32> to vector<1x72xf32>
    %237 = vector.shape_cast %236 : vector<1x72xf32> to vector<72xf32>
    %238 = vector.broadcast %16 : f32 to vector<72xf32>
    %239 = arith.mulf %238, %237 : vector<72xf32>
    %240 = arith.addf %99, %239 : vector<72xf32>
    %241 = vector.extract_strided_slice %232 {offsets = [1, 0], sizes = [1, 72], strides = [1, 1]} : vector<4x72xf32> to vector<1x72xf32>
    %242 = vector.shape_cast %241 : vector<1x72xf32> to vector<72xf32>
    %243 = vector.broadcast %17 : f32 to vector<72xf32>
    %244 = arith.mulf %243, %242 : vector<72xf32>
    %245 = arith.addf %240, %244 : vector<72xf32>
    %246 = vector.extract_strided_slice %232 {offsets = [2, 0], sizes = [1, 72], strides = [1, 1]} : vector<4x72xf32> to vector<1x72xf32>
    %247 = vector.shape_cast %246 : vector<1x72xf32> to vector<72xf32>
    %248 = vector.broadcast %20 : f32 to vector<72xf32>
    %249 = arith.mulf %248, %247 : vector<72xf32>
    %250 = arith.addf %245, %249 : vector<72xf32>
    %251 = vector.extract_strided_slice %232 {offsets = [3, 0], sizes = [1, 72], strides = [1, 1]} : vector<4x72xf32> to vector<1x72xf32>
    %252 = vector.shape_cast %251 : vector<1x72xf32> to vector<72xf32>
    %253 = vector.broadcast %21 : f32 to vector<72xf32>
    %254 = arith.mulf %253, %252 : vector<72xf32>
    %255 = arith.addf %250, %254 : vector<72xf32>
    %256 = vector.extract_strided_slice %233 {offsets = [0, 0], sizes = [1, 72], strides = [1, 1]} : vector<4x72xf32> to vector<1x72xf32>
    %257 = vector.shape_cast %256 : vector<1x72xf32> to vector<72xf32>
    %258 = vector.broadcast %18 : f32 to vector<72xf32>
    %259 = arith.mulf %258, %257 : vector<72xf32>
    %260 = arith.addf %255, %259 : vector<72xf32>
    %261 = vector.extract_strided_slice %233 {offsets = [1, 0], sizes = [1, 72], strides = [1, 1]} : vector<4x72xf32> to vector<1x72xf32>
    %262 = vector.shape_cast %261 : vector<1x72xf32> to vector<72xf32>
    %263 = vector.broadcast %19 : f32 to vector<72xf32>
    %264 = arith.mulf %263, %262 : vector<72xf32>
    %265 = arith.addf %260, %264 : vector<72xf32>
    %266 = vector.extract_strided_slice %233 {offsets = [2, 0], sizes = [1, 72], strides = [1, 1]} : vector<4x72xf32> to vector<1x72xf32>
    %267 = vector.shape_cast %266 : vector<1x72xf32> to vector<72xf32>
    %268 = vector.broadcast %22 : f32 to vector<72xf32>
    %269 = arith.mulf %268, %267 : vector<72xf32>
    %270 = arith.addf %265, %269 : vector<72xf32>
    %271 = vector.extract_strided_slice %233 {offsets = [3, 0], sizes = [1, 72], strides = [1, 1]} : vector<4x72xf32> to vector<1x72xf32>
    %272 = vector.shape_cast %271 : vector<1x72xf32> to vector<72xf32>
    %273 = vector.broadcast %23 : f32 to vector<72xf32>
    %274 = arith.mulf %273, %272 : vector<72xf32>
    %275 = arith.addf %270, %274 : vector<72xf32>
    %276 = vector.extract_strided_slice %234 {offsets = [0, 0], sizes = [1, 72], strides = [1, 1]} : vector<4x72xf32> to vector<1x72xf32>
    %277 = vector.shape_cast %276 : vector<1x72xf32> to vector<72xf32>
    %278 = vector.broadcast %24 : f32 to vector<72xf32>
    %279 = arith.mulf %278, %277 : vector<72xf32>
    %280 = arith.addf %275, %279 : vector<72xf32>
    %281 = vector.extract_strided_slice %234 {offsets = [1, 0], sizes = [1, 72], strides = [1, 1]} : vector<4x72xf32> to vector<1x72xf32>
    %282 = vector.shape_cast %281 : vector<1x72xf32> to vector<72xf32>
    %283 = vector.broadcast %25 : f32 to vector<72xf32>
    %284 = arith.mulf %283, %282 : vector<72xf32>
    %285 = arith.addf %280, %284 : vector<72xf32>
    %286 = vector.extract_strided_slice %234 {offsets = [2, 0], sizes = [1, 72], strides = [1, 1]} : vector<4x72xf32> to vector<1x72xf32>
    %287 = vector.shape_cast %286 : vector<1x72xf32> to vector<72xf32>
    %288 = vector.broadcast %28 : f32 to vector<72xf32>
    %289 = arith.mulf %288, %287 : vector<72xf32>
    %290 = arith.addf %285, %289 : vector<72xf32>
    %291 = vector.extract_strided_slice %234 {offsets = [3, 0], sizes = [1, 72], strides = [1, 1]} : vector<4x72xf32> to vector<1x72xf32>
    %292 = vector.shape_cast %291 : vector<1x72xf32> to vector<72xf32>
    %293 = vector.broadcast %29 : f32 to vector<72xf32>
    %294 = arith.mulf %293, %292 : vector<72xf32>
    %295 = arith.addf %290, %294 : vector<72xf32>
    %296 = vector.extract_strided_slice %235 {offsets = [0, 0], sizes = [1, 72], strides = [1, 1]} : vector<4x72xf32> to vector<1x72xf32>
    %297 = vector.shape_cast %296 : vector<1x72xf32> to vector<72xf32>
    %298 = vector.broadcast %26 : f32 to vector<72xf32>
    %299 = arith.mulf %298, %297 : vector<72xf32>
    %300 = arith.addf %295, %299 : vector<72xf32>
    %301 = vector.extract_strided_slice %235 {offsets = [1, 0], sizes = [1, 72], strides = [1, 1]} : vector<4x72xf32> to vector<1x72xf32>
    %302 = vector.shape_cast %301 : vector<1x72xf32> to vector<72xf32>
    %303 = vector.broadcast %27 : f32 to vector<72xf32>
    %304 = arith.mulf %303, %302 : vector<72xf32>
    %305 = arith.addf %300, %304 : vector<72xf32>
    %306 = vector.extract_strided_slice %235 {offsets = [2, 0], sizes = [1, 72], strides = [1, 1]} : vector<4x72xf32> to vector<1x72xf32>
    %307 = vector.shape_cast %306 : vector<1x72xf32> to vector<72xf32>
    %308 = vector.broadcast %30 : f32 to vector<72xf32>
    %309 = arith.mulf %308, %307 : vector<72xf32>
    %310 = arith.addf %305, %309 : vector<72xf32>
    %311 = vector.extract_strided_slice %235 {offsets = [3, 0], sizes = [1, 72], strides = [1, 1]} : vector<4x72xf32> to vector<1x72xf32>
    %312 = vector.shape_cast %311 : vector<1x72xf32> to vector<72xf32>
    %313 = vector.broadcast %31 : f32 to vector<72xf32>
    %314 = arith.mulf %313, %312 : vector<72xf32>
    %315 = arith.addf %310, %314 : vector<72xf32>
    %316 = vector.broadcast %65 : f32 to vector<72xf32>
    %317 = arith.mulf %316, %315 : vector<72xf32>
    %318 = arith.addf %208, %317 : vector<72xf32>
    %319 = vector.broadcast %69 : f32 to vector<72xf32>
    %320 = arith.mulf %319, %315 : vector<72xf32>
    %321 = arith.addf %211, %320 : vector<72xf32>
    %322 = vector.broadcast %73 : f32 to vector<72xf32>
    %323 = arith.mulf %322, %315 : vector<72xf32>
    %324 = arith.addf %214, %323 : vector<72xf32>
    %325 = vector.broadcast %77 : f32 to vector<72xf32>
    %326 = arith.mulf %325, %315 : vector<72xf32>
    %327 = arith.addf %217, %326 : vector<72xf32>
    %328 = vector.broadcast %81 : f32 to vector<72xf32>
    %329 = arith.mulf %328, %315 : vector<72xf32>
    %330 = arith.addf %220, %329 : vector<72xf32>
    %331 = vector.broadcast %85 : f32 to vector<72xf32>
    %332 = arith.mulf %331, %315 : vector<72xf32>
    %333 = arith.addf %223, %332 : vector<72xf32>
    %334 = vector.broadcast %89 : f32 to vector<72xf32>
    %335 = arith.mulf %334, %315 : vector<72xf32>
    %336 = arith.addf %226, %335 : vector<72xf32>
    %337 = vector.broadcast %93 : f32 to vector<72xf32>
    %338 = arith.mulf %337, %315 : vector<72xf32>
    %339 = arith.addf %229, %338 : vector<72xf32>
    %c0_196 = arith.constant 0 : index
    %c2_197 = arith.constant 2 : index
    %c0_198 = arith.constant 0 : index
    %c0_199 = arith.constant 0 : index
    %340 = vector.load %arg1[%c0_196, %c2_197, %c0_198, %c0_199] : memref<1x4x4x82xf32, #tpu.memory_space<vmem>>, vector<1x1x4x82xf32>
    %341 = vector.shape_cast %340 : vector<1x1x4x82xf32> to vector<4x82xf32>
    %342 = vector.extract_strided_slice %341 {offsets = [0, 0], sizes = [4, 72], strides = [1, 1]} : vector<4x82xf32> to vector<4x72xf32>
    %343 = vector.extract_strided_slice %341 {offsets = [0, 1], sizes = [4, 72], strides = [1, 1]} : vector<4x82xf32> to vector<4x72xf32>
    %344 = vector.extract_strided_slice %341 {offsets = [0, 9], sizes = [4, 72], strides = [1, 1]} : vector<4x82xf32> to vector<4x72xf32>
    %345 = vector.extract_strided_slice %341 {offsets = [0, 10], sizes = [4, 72], strides = [1, 1]} : vector<4x82xf32> to vector<4x72xf32>
    %346 = vector.extract_strided_slice %342 {offsets = [0, 0], sizes = [1, 72], strides = [1, 1]} : vector<4x72xf32> to vector<1x72xf32>
    %347 = vector.shape_cast %346 : vector<1x72xf32> to vector<72xf32>
    %348 = vector.broadcast %32 : f32 to vector<72xf32>
    %349 = arith.mulf %348, %347 : vector<72xf32>
    %350 = arith.addf %101, %349 : vector<72xf32>
    %351 = vector.extract_strided_slice %342 {offsets = [1, 0], sizes = [1, 72], strides = [1, 1]} : vector<4x72xf32> to vector<1x72xf32>
    %352 = vector.shape_cast %351 : vector<1x72xf32> to vector<72xf32>
    %353 = vector.broadcast %33 : f32 to vector<72xf32>
    %354 = arith.mulf %353, %352 : vector<72xf32>
    %355 = arith.addf %350, %354 : vector<72xf32>
    %356 = vector.extract_strided_slice %342 {offsets = [2, 0], sizes = [1, 72], strides = [1, 1]} : vector<4x72xf32> to vector<1x72xf32>
    %357 = vector.shape_cast %356 : vector<1x72xf32> to vector<72xf32>
    %358 = vector.broadcast %36 : f32 to vector<72xf32>
    %359 = arith.mulf %358, %357 : vector<72xf32>
    %360 = arith.addf %355, %359 : vector<72xf32>
    %361 = vector.extract_strided_slice %342 {offsets = [3, 0], sizes = [1, 72], strides = [1, 1]} : vector<4x72xf32> to vector<1x72xf32>
    %362 = vector.shape_cast %361 : vector<1x72xf32> to vector<72xf32>
    %363 = vector.broadcast %37 : f32 to vector<72xf32>
    %364 = arith.mulf %363, %362 : vector<72xf32>
    %365 = arith.addf %360, %364 : vector<72xf32>
    %366 = vector.extract_strided_slice %343 {offsets = [0, 0], sizes = [1, 72], strides = [1, 1]} : vector<4x72xf32> to vector<1x72xf32>
    %367 = vector.shape_cast %366 : vector<1x72xf32> to vector<72xf32>
    %368 = vector.broadcast %34 : f32 to vector<72xf32>
    %369 = arith.mulf %368, %367 : vector<72xf32>
    %370 = arith.addf %365, %369 : vector<72xf32>
    %371 = vector.extract_strided_slice %343 {offsets = [1, 0], sizes = [1, 72], strides = [1, 1]} : vector<4x72xf32> to vector<1x72xf32>
    %372 = vector.shape_cast %371 : vector<1x72xf32> to vector<72xf32>
    %373 = vector.broadcast %35 : f32 to vector<72xf32>
    %374 = arith.mulf %373, %372 : vector<72xf32>
    %375 = arith.addf %370, %374 : vector<72xf32>
    %376 = vector.extract_strided_slice %343 {offsets = [2, 0], sizes = [1, 72], strides = [1, 1]} : vector<4x72xf32> to vector<1x72xf32>
    %377 = vector.shape_cast %376 : vector<1x72xf32> to vector<72xf32>
    %378 = vector.broadcast %38 : f32 to vector<72xf32>
    %379 = arith.mulf %378, %377 : vector<72xf32>
    %380 = arith.addf %375, %379 : vector<72xf32>
    %381 = vector.extract_strided_slice %343 {offsets = [3, 0], sizes = [1, 72], strides = [1, 1]} : vector<4x72xf32> to vector<1x72xf32>
    %382 = vector.shape_cast %381 : vector<1x72xf32> to vector<72xf32>
    %383 = vector.broadcast %39 : f32 to vector<72xf32>
    %384 = arith.mulf %383, %382 : vector<72xf32>
    %385 = arith.addf %380, %384 : vector<72xf32>
    %386 = vector.extract_strided_slice %344 {offsets = [0, 0], sizes = [1, 72], strides = [1, 1]} : vector<4x72xf32> to vector<1x72xf32>
    %387 = vector.shape_cast %386 : vector<1x72xf32> to vector<72xf32>
    %388 = vector.broadcast %40 : f32 to vector<72xf32>
    %389 = arith.mulf %388, %387 : vector<72xf32>
    %390 = arith.addf %385, %389 : vector<72xf32>
    %391 = vector.extract_strided_slice %344 {offsets = [1, 0], sizes = [1, 72], strides = [1, 1]} : vector<4x72xf32> to vector<1x72xf32>
    %392 = vector.shape_cast %391 : vector<1x72xf32> to vector<72xf32>
    %393 = vector.broadcast %41 : f32 to vector<72xf32>
    %394 = arith.mulf %393, %392 : vector<72xf32>
    %395 = arith.addf %390, %394 : vector<72xf32>
    %396 = vector.extract_strided_slice %344 {offsets = [2, 0], sizes = [1, 72], strides = [1, 1]} : vector<4x72xf32> to vector<1x72xf32>
    %397 = vector.shape_cast %396 : vector<1x72xf32> to vector<72xf32>
    %398 = vector.broadcast %44 : f32 to vector<72xf32>
    %399 = arith.mulf %398, %397 : vector<72xf32>
    %400 = arith.addf %395, %399 : vector<72xf32>
    %401 = vector.extract_strided_slice %344 {offsets = [3, 0], sizes = [1, 72], strides = [1, 1]} : vector<4x72xf32> to vector<1x72xf32>
    %402 = vector.shape_cast %401 : vector<1x72xf32> to vector<72xf32>
    %403 = vector.broadcast %45 : f32 to vector<72xf32>
    %404 = arith.mulf %403, %402 : vector<72xf32>
    %405 = arith.addf %400, %404 : vector<72xf32>
    %406 = vector.extract_strided_slice %345 {offsets = [0, 0], sizes = [1, 72], strides = [1, 1]} : vector<4x72xf32> to vector<1x72xf32>
    %407 = vector.shape_cast %406 : vector<1x72xf32> to vector<72xf32>
    %408 = vector.broadcast %42 : f32 to vector<72xf32>
    %409 = arith.mulf %408, %407 : vector<72xf32>
    %410 = arith.addf %405, %409 : vector<72xf32>
    %411 = vector.extract_strided_slice %345 {offsets = [1, 0], sizes = [1, 72], strides = [1, 1]} : vector<4x72xf32> to vector<1x72xf32>
    %412 = vector.shape_cast %411 : vector<1x72xf32> to vector<72xf32>
    %413 = vector.broadcast %43 : f32 to vector<72xf32>
    %414 = arith.mulf %413, %412 : vector<72xf32>
    %415 = arith.addf %410, %414 : vector<72xf32>
    %416 = vector.extract_strided_slice %345 {offsets = [2, 0], sizes = [1, 72], strides = [1, 1]} : vector<4x72xf32> to vector<1x72xf32>
    %417 = vector.shape_cast %416 : vector<1x72xf32> to vector<72xf32>
    %418 = vector.broadcast %46 : f32 to vector<72xf32>
    %419 = arith.mulf %418, %417 : vector<72xf32>
    %420 = arith.addf %415, %419 : vector<72xf32>
    %421 = vector.extract_strided_slice %345 {offsets = [3, 0], sizes = [1, 72], strides = [1, 1]} : vector<4x72xf32> to vector<1x72xf32>
    %422 = vector.shape_cast %421 : vector<1x72xf32> to vector<72xf32>
    %423 = vector.broadcast %47 : f32 to vector<72xf32>
    %424 = arith.mulf %423, %422 : vector<72xf32>
    %425 = arith.addf %420, %424 : vector<72xf32>
    %426 = vector.broadcast %66 : f32 to vector<72xf32>
    %427 = arith.mulf %426, %425 : vector<72xf32>
    %428 = arith.addf %318, %427 : vector<72xf32>
    %429 = vector.broadcast %70 : f32 to vector<72xf32>
    %430 = arith.mulf %429, %425 : vector<72xf32>
    %431 = arith.addf %321, %430 : vector<72xf32>
    %432 = vector.broadcast %74 : f32 to vector<72xf32>
    %433 = arith.mulf %432, %425 : vector<72xf32>
    %434 = arith.addf %324, %433 : vector<72xf32>
    %435 = vector.broadcast %78 : f32 to vector<72xf32>
    %436 = arith.mulf %435, %425 : vector<72xf32>
    %437 = arith.addf %327, %436 : vector<72xf32>
    %438 = vector.broadcast %82 : f32 to vector<72xf32>
    %439 = arith.mulf %438, %425 : vector<72xf32>
    %440 = arith.addf %330, %439 : vector<72xf32>
    %441 = vector.broadcast %86 : f32 to vector<72xf32>
    %442 = arith.mulf %441, %425 : vector<72xf32>
    %443 = arith.addf %333, %442 : vector<72xf32>
    %444 = vector.broadcast %90 : f32 to vector<72xf32>
    %445 = arith.mulf %444, %425 : vector<72xf32>
    %446 = arith.addf %336, %445 : vector<72xf32>
    %447 = vector.broadcast %94 : f32 to vector<72xf32>
    %448 = arith.mulf %447, %425 : vector<72xf32>
    %449 = arith.addf %339, %448 : vector<72xf32>
    %c0_200 = arith.constant 0 : index
    %c3_201 = arith.constant 3 : index
    %c0_202 = arith.constant 0 : index
    %c0_203 = arith.constant 0 : index
    %450 = vector.load %arg1[%c0_200, %c3_201, %c0_202, %c0_203] : memref<1x4x4x82xf32, #tpu.memory_space<vmem>>, vector<1x1x4x82xf32>
    %451 = vector.shape_cast %450 : vector<1x1x4x82xf32> to vector<4x82xf32>
    %452 = vector.extract_strided_slice %451 {offsets = [0, 0], sizes = [4, 72], strides = [1, 1]} : vector<4x82xf32> to vector<4x72xf32>
    %453 = vector.extract_strided_slice %451 {offsets = [0, 1], sizes = [4, 72], strides = [1, 1]} : vector<4x82xf32> to vector<4x72xf32>
    %454 = vector.extract_strided_slice %451 {offsets = [0, 9], sizes = [4, 72], strides = [1, 1]} : vector<4x82xf32> to vector<4x72xf32>
    %455 = vector.extract_strided_slice %451 {offsets = [0, 10], sizes = [4, 72], strides = [1, 1]} : vector<4x82xf32> to vector<4x72xf32>
    %456 = vector.extract_strided_slice %452 {offsets = [0, 0], sizes = [1, 72], strides = [1, 1]} : vector<4x72xf32> to vector<1x72xf32>
    %457 = vector.shape_cast %456 : vector<1x72xf32> to vector<72xf32>
    %458 = vector.broadcast %48 : f32 to vector<72xf32>
    %459 = arith.mulf %458, %457 : vector<72xf32>
    %460 = arith.addf %103, %459 : vector<72xf32>
    %461 = vector.extract_strided_slice %452 {offsets = [1, 0], sizes = [1, 72], strides = [1, 1]} : vector<4x72xf32> to vector<1x72xf32>
    %462 = vector.shape_cast %461 : vector<1x72xf32> to vector<72xf32>
    %463 = vector.broadcast %49 : f32 to vector<72xf32>
    %464 = arith.mulf %463, %462 : vector<72xf32>
    %465 = arith.addf %460, %464 : vector<72xf32>
    %466 = vector.extract_strided_slice %452 {offsets = [2, 0], sizes = [1, 72], strides = [1, 1]} : vector<4x72xf32> to vector<1x72xf32>
    %467 = vector.shape_cast %466 : vector<1x72xf32> to vector<72xf32>
    %468 = vector.broadcast %52 : f32 to vector<72xf32>
    %469 = arith.mulf %468, %467 : vector<72xf32>
    %470 = arith.addf %465, %469 : vector<72xf32>
    %471 = vector.extract_strided_slice %452 {offsets = [3, 0], sizes = [1, 72], strides = [1, 1]} : vector<4x72xf32> to vector<1x72xf32>
    %472 = vector.shape_cast %471 : vector<1x72xf32> to vector<72xf32>
    %473 = vector.broadcast %53 : f32 to vector<72xf32>
    %474 = arith.mulf %473, %472 : vector<72xf32>
    %475 = arith.addf %470, %474 : vector<72xf32>
    %476 = vector.extract_strided_slice %453 {offsets = [0, 0], sizes = [1, 72], strides = [1, 1]} : vector<4x72xf32> to vector<1x72xf32>
    %477 = vector.shape_cast %476 : vector<1x72xf32> to vector<72xf32>
    %478 = vector.broadcast %50 : f32 to vector<72xf32>
    %479 = arith.mulf %478, %477 : vector<72xf32>
    %480 = arith.addf %475, %479 : vector<72xf32>
    %481 = vector.extract_strided_slice %453 {offsets = [1, 0], sizes = [1, 72], strides = [1, 1]} : vector<4x72xf32> to vector<1x72xf32>
    %482 = vector.shape_cast %481 : vector<1x72xf32> to vector<72xf32>
    %483 = vector.broadcast %51 : f32 to vector<72xf32>
    %484 = arith.mulf %483, %482 : vector<72xf32>
    %485 = arith.addf %480, %484 : vector<72xf32>
    %486 = vector.extract_strided_slice %453 {offsets = [2, 0], sizes = [1, 72], strides = [1, 1]} : vector<4x72xf32> to vector<1x72xf32>
    %487 = vector.shape_cast %486 : vector<1x72xf32> to vector<72xf32>
    %488 = vector.broadcast %54 : f32 to vector<72xf32>
    %489 = arith.mulf %488, %487 : vector<72xf32>
    %490 = arith.addf %485, %489 : vector<72xf32>
    %491 = vector.extract_strided_slice %453 {offsets = [3, 0], sizes = [1, 72], strides = [1, 1]} : vector<4x72xf32> to vector<1x72xf32>
    %492 = vector.shape_cast %491 : vector<1x72xf32> to vector<72xf32>
    %493 = vector.broadcast %55 : f32 to vector<72xf32>
    %494 = arith.mulf %493, %492 : vector<72xf32>
    %495 = arith.addf %490, %494 : vector<72xf32>
    %496 = vector.extract_strided_slice %454 {offsets = [0, 0], sizes = [1, 72], strides = [1, 1]} : vector<4x72xf32> to vector<1x72xf32>
    %497 = vector.shape_cast %496 : vector<1x72xf32> to vector<72xf32>
    %498 = vector.broadcast %56 : f32 to vector<72xf32>
    %499 = arith.mulf %498, %497 : vector<72xf32>
    %500 = arith.addf %495, %499 : vector<72xf32>
    %501 = vector.extract_strided_slice %454 {offsets = [1, 0], sizes = [1, 72], strides = [1, 1]} : vector<4x72xf32> to vector<1x72xf32>
    %502 = vector.shape_cast %501 : vector<1x72xf32> to vector<72xf32>
    %503 = vector.broadcast %57 : f32 to vector<72xf32>
    %504 = arith.mulf %503, %502 : vector<72xf32>
    %505 = arith.addf %500, %504 : vector<72xf32>
    %506 = vector.extract_strided_slice %454 {offsets = [2, 0], sizes = [1, 72], strides = [1, 1]} : vector<4x72xf32> to vector<1x72xf32>
    %507 = vector.shape_cast %506 : vector<1x72xf32> to vector<72xf32>
    %508 = vector.broadcast %60 : f32 to vector<72xf32>
    %509 = arith.mulf %508, %507 : vector<72xf32>
    %510 = arith.addf %505, %509 : vector<72xf32>
    %511 = vector.extract_strided_slice %454 {offsets = [3, 0], sizes = [1, 72], strides = [1, 1]} : vector<4x72xf32> to vector<1x72xf32>
    %512 = vector.shape_cast %511 : vector<1x72xf32> to vector<72xf32>
    %513 = vector.broadcast %61 : f32 to vector<72xf32>
    %514 = arith.mulf %513, %512 : vector<72xf32>
    %515 = arith.addf %510, %514 : vector<72xf32>
    %516 = vector.extract_strided_slice %455 {offsets = [0, 0], sizes = [1, 72], strides = [1, 1]} : vector<4x72xf32> to vector<1x72xf32>
    %517 = vector.shape_cast %516 : vector<1x72xf32> to vector<72xf32>
    %518 = vector.broadcast %58 : f32 to vector<72xf32>
    %519 = arith.mulf %518, %517 : vector<72xf32>
    %520 = arith.addf %515, %519 : vector<72xf32>
    %521 = vector.extract_strided_slice %455 {offsets = [1, 0], sizes = [1, 72], strides = [1, 1]} : vector<4x72xf32> to vector<1x72xf32>
    %522 = vector.shape_cast %521 : vector<1x72xf32> to vector<72xf32>
    %523 = vector.broadcast %59 : f32 to vector<72xf32>
    %524 = arith.mulf %523, %522 : vector<72xf32>
    %525 = arith.addf %520, %524 : vector<72xf32>
    %526 = vector.extract_strided_slice %455 {offsets = [2, 0], sizes = [1, 72], strides = [1, 1]} : vector<4x72xf32> to vector<1x72xf32>
    %527 = vector.shape_cast %526 : vector<1x72xf32> to vector<72xf32>
    %528 = vector.broadcast %62 : f32 to vector<72xf32>
    %529 = arith.mulf %528, %527 : vector<72xf32>
    %530 = arith.addf %525, %529 : vector<72xf32>
    %531 = vector.extract_strided_slice %455 {offsets = [3, 0], sizes = [1, 72], strides = [1, 1]} : vector<4x72xf32> to vector<1x72xf32>
    %532 = vector.shape_cast %531 : vector<1x72xf32> to vector<72xf32>
    %533 = vector.broadcast %63 : f32 to vector<72xf32>
    %534 = arith.mulf %533, %532 : vector<72xf32>
    %535 = arith.addf %530, %534 : vector<72xf32>
    %536 = vector.broadcast %67 : f32 to vector<72xf32>
    %537 = arith.mulf %536, %535 : vector<72xf32>
    %538 = arith.addf %428, %537 : vector<72xf32>
    %539 = vector.broadcast %71 : f32 to vector<72xf32>
    %540 = arith.mulf %539, %535 : vector<72xf32>
    %541 = arith.addf %431, %540 : vector<72xf32>
    %542 = vector.broadcast %75 : f32 to vector<72xf32>
    %543 = arith.mulf %542, %535 : vector<72xf32>
    %544 = arith.addf %434, %543 : vector<72xf32>
    %545 = vector.broadcast %79 : f32 to vector<72xf32>
    %546 = arith.mulf %545, %535 : vector<72xf32>
    %547 = arith.addf %437, %546 : vector<72xf32>
    %548 = vector.broadcast %83 : f32 to vector<72xf32>
    %549 = arith.mulf %548, %535 : vector<72xf32>
    %550 = arith.addf %440, %549 : vector<72xf32>
    %551 = vector.broadcast %87 : f32 to vector<72xf32>
    %552 = arith.mulf %551, %535 : vector<72xf32>
    %553 = arith.addf %443, %552 : vector<72xf32>
    %554 = vector.broadcast %91 : f32 to vector<72xf32>
    %555 = arith.mulf %554, %535 : vector<72xf32>
    %556 = arith.addf %446, %555 : vector<72xf32>
    %557 = vector.broadcast %95 : f32 to vector<72xf32>
    %558 = arith.mulf %557, %535 : vector<72xf32>
    %559 = arith.addf %449, %558 : vector<72xf32>
    %c0_204 = arith.constant 0 : index
    %c0_205 = arith.constant 0 : index
    %c0_206 = arith.constant 0 : index
    %560 = vector.load %arg6[%c0_204, %c0_205, %c0_206] : memref<1x8x72xf32, #tpu.memory_space<vmem>>, vector<1x1x72xf32>
    %561 = vector.shape_cast %560 : vector<1x1x72xf32> to vector<72xf32>
    %562 = vector.shape_cast %538 : vector<72xf32> to vector<1x1x72xf32>
    tpu.vector_store %arg6[%c0_204, %c0_205, %c0_206], %562 {strides = array<i32>} : memref<1x8x72xf32, #tpu.memory_space<vmem>>, vector<1x1x72xf32>,
    %c0_207 = arith.constant 0 : index
    %c1_208 = arith.constant 1 : index
    %c0_209 = arith.constant 0 : index
    %563 = vector.load %arg6[%c0_207, %c1_208, %c0_209] : memref<1x8x72xf32, #tpu.memory_space<vmem>>, vector<1x1x72xf32>
    %564 = vector.shape_cast %563 : vector<1x1x72xf32> to vector<72xf32>
    %565 = vector.shape_cast %541 : vector<72xf32> to vector<1x1x72xf32>
    tpu.vector_store %arg6[%c0_207, %c1_208, %c0_209], %565 {strides = array<i32>} : memref<1x8x72xf32, #tpu.memory_space<vmem>>, vector<1x1x72xf32>,
    %c0_210 = arith.constant 0 : index
    %c2_211 = arith.constant 2 : index
    %c0_212 = arith.constant 0 : index
    %566 = vector.load %arg6[%c0_210, %c2_211, %c0_212] : memref<1x8x72xf32, #tpu.memory_space<vmem>>, vector<1x1x72xf32>
    %567 = vector.shape_cast %566 : vector<1x1x72xf32> to vector<72xf32>
    %568 = vector.shape_cast %544 : vector<72xf32> to vector<1x1x72xf32>
    tpu.vector_store %arg6[%c0_210, %c2_211, %c0_212], %568 {strides = array<i32>} : memref<1x8x72xf32, #tpu.memory_space<vmem>>, vector<1x1x72xf32>,
    %c0_213 = arith.constant 0 : index
    %c3_214 = arith.constant 3 : index
    %c0_215 = arith.constant 0 : index
    %569 = vector.load %arg6[%c0_213, %c3_214, %c0_215] : memref<1x8x72xf32, #tpu.memory_space<vmem>>, vector<1x1x72xf32>
    %570 = vector.shape_cast %569 : vector<1x1x72xf32> to vector<72xf32>
    %571 = vector.shape_cast %547 : vector<72xf32> to vector<1x1x72xf32>
    tpu.vector_store %arg6[%c0_213, %c3_214, %c0_215], %571 {strides = array<i32>} : memref<1x8x72xf32, #tpu.memory_space<vmem>>, vector<1x1x72xf32>,
    %c0_216 = arith.constant 0 : index
    %c4_217 = arith.constant 4 : index
    %c0_218 = arith.constant 0 : index
    %572 = vector.load %arg6[%c0_216, %c4_217, %c0_218] : memref<1x8x72xf32, #tpu.memory_space<vmem>>, vector<1x1x72xf32>
    %573 = vector.shape_cast %572 : vector<1x1x72xf32> to vector<72xf32>
    %574 = vector.shape_cast %550 : vector<72xf32> to vector<1x1x72xf32>
    tpu.vector_store %arg6[%c0_216, %c4_217, %c0_218], %574 {strides = array<i32>} : memref<1x8x72xf32, #tpu.memory_space<vmem>>, vector<1x1x72xf32>,
    %c0_219 = arith.constant 0 : index
    %c5_220 = arith.constant 5 : index
    %c0_221 = arith.constant 0 : index
    %575 = vector.load %arg6[%c0_219, %c5_220, %c0_221] : memref<1x8x72xf32, #tpu.memory_space<vmem>>, vector<1x1x72xf32>
    %576 = vector.shape_cast %575 : vector<1x1x72xf32> to vector<72xf32>
    %577 = vector.shape_cast %553 : vector<72xf32> to vector<1x1x72xf32>
    tpu.vector_store %arg6[%c0_219, %c5_220, %c0_221], %577 {strides = array<i32>} : memref<1x8x72xf32, #tpu.memory_space<vmem>>, vector<1x1x72xf32>,
    %c0_222 = arith.constant 0 : index
    %c6_223 = arith.constant 6 : index
    %c0_224 = arith.constant 0 : index
    %578 = vector.load %arg6[%c0_222, %c6_223, %c0_224] : memref<1x8x72xf32, #tpu.memory_space<vmem>>, vector<1x1x72xf32>
    %579 = vector.shape_cast %578 : vector<1x1x72xf32> to vector<72xf32>
    %580 = vector.shape_cast %556 : vector<72xf32> to vector<1x1x72xf32>
    tpu.vector_store %arg6[%c0_222, %c6_223, %c0_224], %580 {strides = array<i32>} : memref<1x8x72xf32, #tpu.memory_space<vmem>>, vector<1x1x72xf32>,
    %c0_225 = arith.constant 0 : index
    %c7_226 = arith.constant 7 : index
    %c0_227 = arith.constant 0 : index
    %581 = vector.load %arg6[%c0_225, %c7_226, %c0_227] : memref<1x8x72xf32, #tpu.memory_space<vmem>>, vector<1x1x72xf32>
    %582 = vector.shape_cast %581 : vector<1x1x72xf32> to vector<72xf32>
    %583 = vector.shape_cast %559 : vector<72xf32> to vector<1x1x72xf32>
    tpu.vector_store %arg6[%c0_225, %c7_226, %c0_227], %583 {strides = array<i32>} : memref<1x8x72xf32, #tpu.memory_space<vmem>>, vector<1x1x72xf32>,
    return
  }
  func.func @transform_0(%arg0: i32) -> (i32, i32, i32, i32) {
    %c0_i32 = arith.constant 0 : i32
    %c0_i32_0 = arith.constant 0 : i32
    %c0_i32_1 = arith.constant 0 : i32
    %c0_i32_2 = arith.constant 0 : i32
    return %arg0, %c0_i32, %c0_i32_0, %c0_i32_1 : i32, i32, i32, i32
  }
  func.func @transform_1(%arg0: i32) -> (i32, i32) {
    %c0_i32 = arith.constant 0 : i32
    %c0_i32_0 = arith.constant 0 : i32
    %c0_i32_1 = arith.constant 0 : i32
    return %c0_i32, %c0_i32_0 : i32, i32
  }
  func.func @transform_2(%arg0: i32) -> i32 {
    %c0_i32 = arith.constant 0 : i32
    %c0_i32_0 = arith.constant 0 : i32
    return %c0_i32 : i32
  }
  func.func @transform_3(%arg0: i32) -> (i32, i32) {
    %c0_i32 = arith.constant 0 : i32
    %c0_i32_0 = arith.constant 0 : i32
    %c0_i32_1 = arith.constant 0 : i32
    return %c0_i32, %c0_i32_0 : i32, i32
  }
  func.func @transform_4(%arg0: i32) -> i32 {
    %c0_i32 = arith.constant 0 : i32
    %c0_i32_0 = arith.constant 0 : i32
    return %c0_i32 : i32
  }
  func.func @transform_5(%arg0: i32) -> (i32, i32, i32) {
    %c0_i32 = arith.constant 0 : i32
    %c0_i32_0 = arith.constant 0 : i32
    %c0_i32_1 = arith.constant 0 : i32
    return %arg0, %c0_i32, %c0_i32_0 : i32, i32, i32
  }
}

</mosaic_0001>

<bundles_post_ra>
// kernel: tpu_custom_call.1
= control target key start
LH: loop header
LB: loop body
LE: loop exit
PB: predicated region body
PF: predicated region fallthrough
CT: control target
= control target key end

     0   :  { %s2022_s0 = inlined_call_operand.hbm [shape: f32[2,4,4,82], index: 0, kind: input, shape index: {}]   ;;  %s2023_s1 = inlined_call_operand.vmem [shape: f32[4,16], index: 1, kind: input, shape index: {}]   ;;  %s2024_s2 = inlined_call_operand.vmem [shape: f32[4], index: 2, kind: input, shape index: {}]   ;;  %s2025_s3 = inlined_call_operand.vmem [shape: f32[8,4], index: 3, kind: input, shape index: {}]   ;;  %s2026_s4 = inlined_call_operand.vmem [shape: f32[8], index: 4, kind: input, shape index: {}]   ;;  %s2027_s5 = inlined_call_operand.hbm [shape: f32[2,8,72], index: 5, kind: output, shape index: {}]  }
   0x1   :  { %2032 = sst [smem:[#allocation22_spill]] %s2022_s0 }
   0x2   :  { %2033 = sst [smem:[#allocation23_spill]] %s2023_s1 }
   0x3   :  { %2034 = sst [smem:[#allocation24_spill]] %s2024_s2 }
   0x4   :  { %2035 = sst [smem:[#allocation25_spill]] %s2025_s3 }
   0x5   :  { %2036 = sst [smem:[#allocation26_spill]] %s2026_s4 }
   0x6   :  { %10 = vsyncpa [#allocation3], 0 }
   0x7   :  { %12 = vsyncpa [#allocation3 + $0x1], 0 }
   0x8   :  { %13 = vsyncpa [#allocation5], 0 }
   0x9   :  { %14 = vsyncpa [#allocation8], 0 }
   0xa   :  { %15 = vsyncpa [#allocation11], 0 }
   0xb   :  { %16 = vsyncpa [#allocation4], 0 }
   0xc   :  { %18 = vsyncpa [#allocation4 + $0x1], 0  ;;  %s1542_s18 = smov 0   ;;  %s1544_s19 = smov 0  }
   0xd   :  { %s1546_s20 = smov 0   ;;  %s1548_s21 = smov 0  }
   0xe LB: > { %2037 = sst [smem:[#allocation18_spill]] %s1493_s19  ;;  %s1563_s22 = sadd.s32 4294967295, %s1501_s21   ;;  %s1501_s21 = sphi %s1548_s21, %s2052_s21   ;;  %s1497_s20 = sphi %s1546_s20, %s2055_s20   ;;  %s1493_s19 = sphi %s1544_s19, %s2054_s19   ;;  %s1489_s18 = sphi %s1542_s18, %s2053_s18  }
   0xf   : > { %2038 = sst [smem:[#allocation19_spill]] %s1497_s20  ;;  %s1112_s23 = sadd.s32 4294967294, %s1501_s21  }
  0x10   : > { %p44_p0 = scmp.ne.s32.totalorder %s1493_s19, %s1489_s18  ;;  %p45_p1 = scmp.eq.s32.totalorder %s1563_s22, 0 }
  0x11   : > { %p152_p2 = scmp.eq.s32.totalorder %s1563_s22, 1  ;;  %p158_p3 = scmp.eq.s32.totalorder %s1112_s23, 1 }
  0x12   : > { %p1572_p4 = por %p45_p1, %p44_p0  ;;  %p1113_p5 = scmp.ge.s32.totalorder %s1501_s21, 1 }
  0x13   : > { %p1577_p6 = por %p158_p3, %p44_p0  ;;  %p165_p7 = scmp.lt.s32.totalorder %s1501_s21, 3 }
  0x14   : > { %s2041_s2 = sld [smem:[#allocation24_spill]]  ;;  %s1503_s14 = smov [#allocation7]  }
  0x15   : > { %p1585_p8 = pnand %p1113_p5, %p165_p7  ;;  %s2043_s1 = sld [smem:[#allocation23_spill]] }
  0x16   : > { %s2044_s3 = sld [smem:[#allocation25_spill]]  ;;  %s1504_s15 = smov [#allocation6]  }
  0x17   : > { %p1261_p10 = pneg %p1585_p8  ;;  %s2045_s4 = sld [smem:[#allocation26_spill]] }
  0x18   : > { %s1505_s16 = smov [#allocation9]   ;;  %s1506_s17 = smov [#allocation10]  }
  0x19   : > { %p1262_p11 = pnand %p1261_p10, %p45_p1  ;;  %s1604_s23 = sadd.s32 1, %s1501_s21  }
  0x1a   : > { %s187_s28 = sshll.u32 %s2041_s2, 4  ;;  %2046 = sst [smem:[#allocation20_spill]] %s1604_s23  ;;  %s188_s28 = int_to_ptr.vmem [resolvable:$true] %s187_s28 }
  0x1b   : > { %s177_s7 = sshll.u32 %s2043_s1, 4  ;;  %s28_s26 = ssub.s32 %s1501_s21, %s1604_s23  ;;  %s178_s7 = int_to_ptr.vmem [resolvable:$true] %s177_s7 }
  0x1c   : > { %s197_s10 = sshll.u32 %s2044_s3, 4  ;;  %p29_p12 = scmp.eq.s32.totalorder %s28_s26, 0  ;;  %s198_s10 = int_to_ptr.vmem [resolvable:$true] %s197_s10 }
  0x1d   : > { %s207_s13 = sshll.u32 %s2045_s4, 4  ;;  %s31_s27 = sadd.s32 1, %s1497_s20  ;;  %s208_s13 = int_to_ptr.vmem [resolvable:$true] %s207_s13 }
  0x1e   : > { %1267 = dma.vmem_to_smem (!%p1262_p11), %s188_s28, 16, %s1503_s14, [#allocation8]  }
  0x1f   : > { %1264 = dma.vmem_to_smem (!%p1262_p11), %s178_s7, 64, %s1504_s15, [#allocation5]  }
  0x20   : > { %1270 = dma.vmem_to_smem (!%p1262_p11), %s198_s10, 128, %s1505_s16, [#allocation8]  }
  0x21   : > { %1273 = dma.vmem_to_smem (!%p1262_p11), %s208_s13, 16, %s1506_s17, [#allocation11]  }
  0x22   : > { %p38_p13 = scmp.ne.s32.totalorder %s1497_s20, %s1493_s19  ;;  %p39_p0 = scmp.eq.s32.totalorder %s1501_s21, 0 }
  0x23   : > { %s1613_s28 = scalar_select %p29_p12, %s1497_s20, %s31_s27  }
  0x24   : > { %p40_p3 = por %p39_p0, %p38_p13  ;;  %p1617_p5 = por %p152_p2, %p38_p13 }
  0x25   : > { %2047 = sst [smem:[#allocation21_spill]] %s1613_s28  ;;  %p1286_p7 = scmp.lt.s32.totalorder %s1501_s21, 2 }
  0x26   : > { %s218_s6 = sand.u32 1, %s1497_s20   ;;  %s1240_s8 = sshll.u32 %s1501_s21, 4 }
  0x27   : > { %s1119_s7 = sshll.u32 %s218_s6, 4  ;;  %s2049_s0 = sld [smem:[#allocation22_spill]] }
  0x28   : > { %s222_s12 = scalar_lea.vmem [#allocation2], %s1119_s7  ;;  %p1627_p10 = pnand %p1286_p7, %p40_p3 }
  0x29   : > { %s230_s13 = sshll.u32 %s222_s12, 4  ;;  %s219_s16 = scalar_lea.sflag [#allocation3], %s218_s6  ;;  %s231_s13 = int_to_ptr.vmem [resolvable:$true] %s230_s13 }
  0x2a   : > { %p1397_p11 = pneg %p1627_p10 }
  0x2d   : > { %s227_s11 = scalar_lea.hbm %s2049_s0, %s1240_s8  ;;  %s1400_s8 = scalar_lea.hbm %s2049_s0, 32 }
  0x2e   : > { %s228_s14 = sshll.u32 %s227_s11, 4  ;;  %s229_s14 = int_to_ptr.hbm [resolvable:$true] %s228_s14 }
  0x2f   : > { %s1393_s17 = sshra.s32 %s229_s14, 4  ;;  %s1394_s17 = int_to_ptr.hbm [resolvable:$true] %s1393_s17 }
  0x30   : > { %s1395_s26 = scalar_lea.hbm %s1394_s17, 16  ;;  %p1401_p0 = scmp.lt.s32.totalorder %s1394_s17, %s2049_s0 }
  0x31   : > { %p1396_p2 = scmp.ne.s32.totalorder %s1394_s17, %s1395_s26  ;;  %p1402_p3 = scmp.lt.s32.totalorder %s1400_s8, %s1395_s26 }
  0x33   : > { %p1398_p12 = pnand %p1397_p11, %p1396_p2  ;;  %p1403_p7 = por %p1402_p3, %p1401_p0 }
  0x35   : > { %p1399_p13 = pneg %p1398_p12 }
  0x37   : > { %p1404_p9 = pnand %p1403_p7, %p1399_p13 }
  0x39   : > { %1407 = shalt.err (!%p1404_p9)
}
  0x3a   : > { %s1507_s6 = smov 64   ;;  %s1508_s11 = smov 4  }
  0x3b   : > { %1277 = dma.hbm_to_vmem [thread:$0]  (!%p1627_p10), %s229_s14, 256, %s231_s13, %s219_s16, %s1507_s6, %s1507_s6, %s1508_s11  }
  0x3c   : > { %242 = sbr.rel (%p1585_p8) target bundleno = 339 (0x153), region = 40  ;;  %s1644_s12 = sand.u32 (!%p1585_p8), 1, %s1493_s19  }
  0x3d   : > { %s1123_s27 = sshll.u32 (!%p1585_p8), %s1644_s12, 4  ;;  %s245_s17 = scalar_lea.sflag (!%p1585_p8), [#allocation3], %s1644_s12 }
  0x3e   : > { %s1648_s26 = scalar_lea.vmem (!%p1585_p8), [#allocation2], %s1123_s27 }
  0x41   : > { %1468 = dma.done.wait (%p1572_p4), %s245_s17, 256  }
  0x42   : > { %1470 = vsyncadd (%p1572_p4), %s245_s17, 4294967040 }
  0x43   : > { %1472 = dma.done.wait (%p45_p1), [#allocation5], 64  }
  0x44   : > { %1474 = vsyncadd (%p45_p1), [#allocation5], 4294967232 }
  0x45   : > { %1476 = dma.done.wait (%p45_p1), [#allocation8], 144  }
  0x46   : > { %1478 = vsyncadd (%p45_p1), [#allocation8], 4294967152 }
  0x47   : > { %1480 = dma.done.wait (%p45_p1), [#allocation11], 16  }
  0x48   : > { %1482 = vsyncadd (%p45_p1), [#allocation11], 4294967280 }
  0x49   : > { %274 = sfence }
  0x4a   : > { %s1130_s24 = sld [smem:[#allocation6 + $0x2]]  ;;  %v1667_v0 = vld [vmem:[%s1648_s26] sm:$0xf]  ;;  %s1509_s7 = smov 127   ;;  %v1692_v33 = vld [vmem:[%s1648_s26 + $0x4] sm:$0xf] }
  0x4b   : > { %s1134_s29 = sld [smem:[#allocation6 + $0x6]]  ;;  %s1510_s6 = smov 119   ;;  %vm976_vm0 = vcmask 581632  }
  0x4c   : > { %s1131_s13 = sld [smem:[#allocation6 + $0x3]] }
  0x4d   : > { %s1135_s14 = sld [smem:[#allocation6 + $0x7]] }
  0x4e   : > { %s1140_s15 = sld [smem:[#allocation6 + $0xc]] }
  0x4f   : > { %s1136_s16 = sld [smem:[#allocation6 + $0x8]] }
  0x50   : > { %v439_v1 = vstv %s1130_s24  ;;  %s1141_s8 = sld [smem:[#allocation6 + $0xd]] }
  0x51   : > { %v440_v2 = vmul.f32 %v439_v1, %v1667_v0  ;;  %v454_v3 = vstv %s1134_s29  ;;  %s1137_s9 = sld [smem:[#allocation6 + $0x9]] }
  0x52   : > { %v455_v4 = vmul.f32 %v454_v3, %v1667_v0  ;;  %v446_v5 = vstv %s1131_s13  ;;  %s1139_s10 = sld [smem:[#allocation6 + $0xb]] }
  0x53   : > { %442 = vrot.lane.b32.xlu0 %v440_v2, %s1509_s7  ;;  %v447_v6 = vmul.f32 %v446_v5, %v1667_v0  ;;  %v462_v7 = vstv %s1135_s14  ;;  %s1142_s11 = sld [smem:[#allocation6 + $0xe]] }
  0x54   : > { %v457_v8 = vrot.slane %v455_v4, 2  ;;  %v463_v9 = vmul.f32 %v462_v7, %v1667_v0  ;;  %v485_v12 = vstv %s1140_s15  ;;  %s1138_s27 = sld [smem:[#allocation6 + $0xa]]  ;;  %s1511_s15 = smov 118   ;;  %v1719_v4 = vld [vmem:[%s1648_s26 + $0x8] sm:$0xf] }
  0x55   : > { %v449_v10 = vrot.slane %v447_v6, 1  ;;  %v470_v11 = vstv %s1136_s16  ;;  %v486_v16 = vmul.f32 %v485_v12, %v1667_v0  ;;  %s1143_s17 = sld [smem:[#allocation6 + $0xf]] }
  0x56   : > { %458 = vrot.lane.b32.xlu1 %v457_v8, %s1509_s7  ;;  %v471_v13 = vmul.f32 %v470_v11, %v1667_v0  ;;  %v465_v14 = vrot.slane %v463_v9, 3  ;;  %v493_v17 = vstv %s1141_s8  ;;  %s1147_s24 = sld [smem:[#allocation6 + $0x83]] }
  0x57   : > { %v477_v15 = vstv %s1137_s9  ;;  %v494_v19 = vmul.f32 %v493_v17, %v1667_v0  ;;  %v488_v21 = vrot.slane %v486_v16, 2  ;;  %s1146_s29 = sld [smem:[#allocation6 + $0x82]] }
  0x58   : > { %473 = vrot.lane.b32.xlu2 %v471_v13, %s1510_s6  ;;  %v478_v18 = vmul.f32 %v477_v15, %v1667_v0  ;;  %v508_v22 = vstv %s1139_s10  ;;  %s1150_s13 = sld [smem:[#allocation6 + $0x86]]  ;;  %v1728_v13 = vld [vmem:[%s1648_s26 + $0xc] sm:$0xf] }
  0x59   : > { %v496_v23 = vrot.slane %v494_v19, 3  ;;  %v509_v24 = vmul.f32 %v508_v22, %v1667_v0  ;;  %v516_v25 = vstv %s1142_s11  ;;  %s1151_s14 = sld [smem:[#allocation6 + $0x87]] }
  0x5a   : > { %v480_v20 = vrot.slane %v478_v18, 1  ;;  %v501_v26 = vstv %s1138_s27  ;;  %v517_v27 = vmul.f32 %v516_v25, %v1667_v0  ;;  %s1152_s16 = sld [smem:[#allocation6 + $0x88]] }
  0x5b   : > { %450 = vrot.lane.b32.xlu0 %v449_v10, %s1509_s7  ;;  %v502_v28 = vmul.f32 %v501_v26, %v1667_v0  ;;  %v511_v29 = vrot.slane %v509_v24, 1  ;;  %v524_v30 = vstv %s1143_s17  ;;  %s1153_s8 = sld [smem:[#allocation6 + $0x89]] }
  0x5c   : > { %v519_v31 = vrot.slane %v517_v27, 2  ;;  %v525_v32 = vmul.f32 %v524_v30, %v1667_v0  ;;  %v586_v34 = vstv %s1147_s24  ;;  %s1156_s9 = sld [smem:[#allocation6 + $0x8c]] }
  0x5d   : > { %v579_v35 = vstv %s1146_s29  ;;  %v587_v36 = vmul.f32 %v1692_v33, %v586_v34  ;;  %s1157_s10 = sld [smem:[#allocation6 + $0x8d]] }
  0x5e   : > { %466 = vrot.lane.b32.xlu1 %v465_v14, %s1509_s7  ;;  %v527_v37 = vrot.slane %v525_v32, 3  ;;  %v580_v38 = vmul.f32 %v1692_v33, %v579_v35  ;;  %v594_v39 = vstv %s1150_s13  ;;  %s1155_s11 = sld [smem:[#allocation6 + $0x8b]] }
  0x5f   : > { %v602_v40 = vstv %s1151_s14  ;;  %v589_v41 = vrot.slane %v587_v36, 1  ;;  %v595_v42 = vmul.f32 %v1692_v33, %v594_v39  ;;  %s1158_s27 = sld [smem:[#allocation6 + $0x8e]] }
  0x60   : > { %481 = vrot.lane.b32.xlu2 %v480_v20, %s1510_s6  ;;  %v603_v43 = vmul.f32 %v1692_v33, %v602_v40  ;;  %v610_v46 = vstv %s1152_s16  ;;  %s1154_s17 = sld [smem:[#allocation6 + $0x8a]] }
  0x61   : > { %v597_v44 = vrot.slane %v595_v42, 2  ;;  %v617_v47 = vstv %s1153_s8  ;;  %v611_v49 = vmul.f32 %v1692_v33, %v610_v46  ;;  %s1159_s24 = sld [smem:[#allocation6 + $0x8f]] }
  0x62   : > { %v605_v45 = vrot.slane %v603_v43, 3  ;;  %v625_v48 = vstv %s1156_s9  ;;  %v618_v50 = vmul.f32 %v1692_v33, %v617_v47  ;;  %s1163_s29 = sld [smem:[#allocation6 + $0x103]] }
  0x63   : > { %489 = vrot.lane.b32.xlu0 %v488_v21, %s1510_s6  ;;  %v626_v51 = vmul.f32 %v1692_v33, %v625_v48  ;;  %v633_v52 = vstv %s1157_s10  ;;  %s1162_s13 = sld [smem:[#allocation6 + $0x102]] }
  0x64   : > { %v634_v53 = vmul.f32 %v1692_v33, %v633_v52  ;;  %v620_v54 = vrot.slane %v618_v50, 1  ;;  %v648_v56 = vstv %s1155_s11  ;;  %s1166_s14 = sld [smem:[#allocation6 + $0x106]] }
  0x65   : > { %v628_v55 = vrot.slane %v626_v51, 2  ;;  %v649_v58 = vmul.f32 %v1692_v33, %v648_v56  ;;  %v656_v59 = vstv %s1158_s27  ;;  %s1179_s16 = sld [smem:[#allocation6 + $0x183]] }
  0x66   : > { %497 = vrot.lane.b32.xlu1 %v496_v23, %s1510_s6  ;;  %v636_v57 = vrot.slane %v634_v53, 3  ;;  %v641_v60 = vstv %s1154_s17  ;;  %v657_v61 = vmul.f32 %v1692_v33, %v656_v59  ;;  %s1178_s8 = sld [smem:[#allocation6 + $0x182]] }
  0x67   : > { %v642_v62 = vmul.f32 %v1692_v33, %v641_v60  ;;  %v651_v63 = vrot.slane %v649_v58, 1  ;;  %v664_v1 = vstv %s1159_s24  ;;  %s1167_s9 = sld [smem:[#allocation6 + $0x107]] }
  0x68   : > { %504 = vrot.lane.b32.xlu2 %v502_v28, %s1511_s15  ;;  %v659_v2 = vrot.slane %v657_v61, 2  ;;  %v665_v3 = vmul.f32 %v1692_v33, %v664_v1  ;;  %v726_v5 = vstv %s1163_s29  ;;  %s1182_s10 = sld [smem:[#allocation6 + $0x186]] }
  0x69   : > { %v719_v6 = vstv %s1162_s13  ;;  %v727_v7 = vmul.f32 %v1719_v4, %v726_v5  ;;  %s1168_s11 = sld [smem:[#allocation6 + $0x108]] }
  0x6a   : > { %v667_v8 = vrot.slane %v665_v3, 3  ;;  %v720_v9 = vmul.f32 %v1719_v4, %v719_v6  ;;  %v734_v10 = vstv %s1166_s14  ;;  %s1183_s27 = sld [smem:[#allocation6 + $0x187]] }
  0x6b   : > { %512 = vrot.lane.b32.xlu0 %v511_v29, %s1511_s15  ;;  %v729_v11 = vrot.slane %v727_v7, 1  ;;  %v735_v12 = vmul.f32 %v1719_v4, %v734_v10  ;;  %v866_v14 = vstv %s1179_s16  ;;  %s1169_s17 = sld [smem:[#allocation6 + $0x109]] }
  0x6c   : > { %v859_v15 = vstv %s1178_s8  ;;  %v867_v16 = vmul.f32 %v1728_v13, %v866_v14  ;;  %s1184_s26 = sld [smem:[#allocation6 + $0x188]] }
  0x6d   : > { %v860_v17 = vmul.f32 %v1728_v13, %v859_v15  ;;  %v737_v18 = vrot.slane %v735_v12, 2  ;;  %v742_v19 = vstv %s1167_s9  ;;  %s1172_s24 = sld [smem:[#allocation6 + $0x10c]] }
  0x6e   : > { %520 = vrot.lane.b32.xlu1 %v519_v31, %s1511_s15  ;;  %v874_v20 = vstv %s1182_s10  ;;  %v869_v21 = vrot.slane %v867_v16, 1  ;;  %v743_v22 = vmul.f32 %v1719_v4, %v742_v19  ;;  %s1185_s29 = sld [smem:[#allocation6 + $0x189]] }
  0x6f   : > { %v875_v23 = vmul.f32 %v1728_v13, %v874_v20  ;;  %v750_v26 = vstv %s1168_s11  ;;  %s1173_s13 = sld [smem:[#allocation6 + $0x10d]] }
  0x70   : > { %528 = vrot.lane.b32.xlu2 %v527_v37, %s1511_s15  ;;  %v745_v24 = vrot.slane %v743_v22, 3  ;;  %v882_v27 = vstv %s1183_s27  ;;  %v751_v29 = vmul.f32 %v1719_v4, %v750_v26  ;;  %s1188_s14 = sld [smem:[#allocation6 + $0x18c]] }
  0x71   : > { %v877_v25 = vrot.slane %v875_v23, 2  ;;  %v757_v28 = vstv %s1169_s17  ;;  %v883_v30 = vmul.f32 %v1728_v13, %v882_v27  ;;  %s1745_s16 = sld [smem:[#allocation6 + $0x10a]] }
  0x72   : > { %v758_v31 = vmul.f32 %v1719_v4, %v757_v28  ;;  %v890_v35 = vstv %s1184_s26  ;;  %s1189_s8 = sld [smem:[#allocation6 + $0x18d]] }
  0x73   : > { %582 = vrot.lane.b32.xlu0 %v580_v38, %s1509_s7  ;;  %v885_v32 = vrot.slane %v883_v30, 3  ;;  %v765_v36 = vstv %s1172_s24  ;;  %v891_v38 = vmul.f32 %v1728_v13, %v890_v35  ;;  %s297_s9 = sld [smem:[#allocation6]] }
  0x74   : > { %v760_v34 = vrot.slane %v758_v31, 1  ;;  %v897_v37 = vstv %s1185_s29  ;;  %v766_v39 = vmul.f32 %v1719_v4, %v765_v36  ;;  %s1129_s10 = sld [smem:[#allocation6 + $0x1]] }
  0x75   : > { %v898_v40 = vmul.f32 %v1728_v13, %v897_v37  ;;  %s1171_s11 = sld [smem:[#allocation6 + $0x10b]] }
  0x76   : > { %590 = vrot.lane.b32.xlu1 %v589_v41, %s1509_s7  ;;  %v773_v41 = vstv %s1173_s13  ;;  %v768_v43 = vrot.slane %v766_v39, 2  ;;  %s1755_s27 = sld [smem:[#allocation7]] }
  0x77   : > { %v774_v42 = vmul.f32 %v1719_v4, %v773_v41  ;;  %s1760_s17 = sld [smem:[#allocation6 + $0x10e]] }
  0x78   : > { %598 = vrot.lane.b32.xlu2 %v597_v44, %s1509_s7  ;;  %v900_v44 = vrot.slane %v898_v40, 1  ;;  %v913_v48 = vstv %s1189_s8  ;;  %s1763_s26 = sld [smem:[#allocation6 + $0x18a]] }
  0x79   : > { %v776_v46 = vrot.slane %v774_v42, 3  ;;  %s1767_s24 = sld [smem:[#allocation6 + $0x5]]  ;;  %v418_v51 = vstv %s297_s9  ;;  %v914_v53 = vmul.f32 %v1728_v13, %v913_v48 }
  0x7a   : > { %v421_v52 = vstv %s1129_s10  ;;  %s1772_s29 = sld [smem:[#allocation6 + $0x18b]] }
  0x7b   : > { %606 = vrot.lane.b32.xlu0 %v605_v45, %s1509_s7  ;;  %v905_v45 = vstv %s1188_s14  ;;  %v788_v56 = vstv %s1171_s11  ;;  %v422_v58 = vmul.f32 %v421_v52, %v1667_v0  ;;  %s1175_s13 = sld [smem:[#allocation6 + $0x10f]]  ;;  %v916_v61 = vrot.slane %v914_v53, 3 }
  0x7c   : > { %v906_v47 = vmul.f32 %v1728_v13, %v905_v45  ;;  %v394_v59 = vstv %s1755_s27  ;;  %s1190_s14 = sld [smem:[#allocation6 + $0x18e]] }
  0x7d   : > { %v424_v5 = vrot.slane %v422_v58, 1  ;;  %s1145_s8 = sld [smem:[#allocation6 + $0x81]] }
  0x7e   : > { %613 = vrot.lane.b32.xlu1 %v611_v49, %s1510_s6  ;;  %v781_v49 = vstv %s1745_s16  ;;  %v921_v1 = vstv %s1763_s26  ;;  %s1191_s16 = sld [smem:[#allocation6 + $0x18f]] }
  0x7f   : > { %v433_v7 = vstv %s1767_s24  ;;  %v922_v10 = vmul.f32 %v1728_v13, %v921_v1  ;;  %s1148_s9 = sld [smem:[#allocation6 + $0x84]] }
  0x80   : > { %621 = vrot.lane.b32.xlu2 %v620_v54, %s1510_s6  ;;  %v908_v54 = vrot.slane %v906_v47, 2  ;;  %v434_v14 = vmul.f32 %v433_v7, %v1667_v0  ;;  %s1223_s10 = sld [smem:[#allocation7 + $0x1]] }
  0x81   : > { %v804_v16 = vstv %s1175_s13  ;;  %s1149_s11 = sld [smem:[#allocation6 + $0x85]] }
  0x82   : > { %v805_v19 = vmul.f32 %v1719_v4, %v804_v16  ;;  %v936_v20 = vstv %s1190_s14  ;;  %s1812_s27 = sld [smem:[#allocation9 + $0x100]] }
  0x83   : > { %629 = vrot.lane.b32.xlu0 %v628_v55, %s1510_s6  ;;  %v782_v55 = vmul.f32 %v1719_v4, %v781_v49  ;;  %v561_v42 = vstv %s1145_s8  ;;  %s1816_s26 = sld [smem:[#allocation9 + $0x200]] }
  0x84   : > { %v807_v26 = vrot.slane %v805_v19, 3  ;;  %v944_v27 = vstv %s1191_s16  ;;  %s1818_s24 = sld [smem:[#allocation9 + $0x280]] }
  0x85   : > { %v945_v31 = vmul.f32 %v1728_v13, %v944_v27  ;;  %v567_v49 = vstv %s1148_s9  ;;  %s1822_s13 = sld [smem:[#allocation9 + $0x380]] }
  0x86   : > { %637 = vrot.lane.b32.xlu1 %v636_v57, %s1510_s6  ;;  %v419_v57 = vmul.f32 %v418_v51, %v1667_v0  ;;  %v396_v48 = vstv %s1223_s10  ;;  %s1824_s14 = sld [smem:[#allocation10]] }
  0x87   : > { %v947_v37 = vrot.slane %v945_v31, 3  ;;  %v573_v58 = vstv %s1149_s11  ;;  %s1826_s16 = sld [smem:[#allocation10 + $0x1]] }
  0x88   : > { %644 = vrot.lane.b32.xlu2 %v642_v62, %s1511_s15  ;;  %v789_v62 = vmul.f32 %v1719_v4, %v788_v56  ;;  %v420_v3 = vadd.f32 %v419_v57, %v394_v59  ;;  %v568_v56 = vmul.f32 %v1692_v33, %v567_v49  ;;  %s1830_s8 = sld [smem:[#allocation10 + $0x3]] }
  0x89   : > { %s1832_s9 = sld [smem:[#allocation10 + $0x4]] }
  0x8a   : > { %v426_v15 = vadd.f32 %v424_v5, %v420_v3  ;;  %s1834_s10 = sld [smem:[#allocation10 + $0x5]] }
  0x8b   : > { %652 = vrot.lane.b32.xlu0 %v651_v63, %s1511_s15  ;;  %v796_v63 = vstv %s1760_s17  ;;  %s1814_s17 = sld [smem:[#allocation9 + $0x180]] }
  0x8c   : > { %s1836_s11 = sld [smem:[#allocation10 + $0x6]] }
  0x8d   : > { %s1838_s0 = sld [smem:[#allocation10 + $0x7]] }
  0x8e   : > { %660 = vrot.lane.b32.xlu1 %v659_v2, %s1511_s15  ;;  %s1840_s1 = sld [smem:[#allocation9 + $0x1]]  ;;  %v408_v27 = vstv %s1830_s8 }
  0x8f   : > { %s1842_s2 = sld [smem:[#allocation9 + $0x81]] }
  0x90   : > { %668 = vrot.lane.b32.xlu2 %v667_v8, %s1511_s15  ;;  %v797_v8 = vmul.f32 %v1719_v4, %v796_v63  ;;  %s1844_s3 = sld [smem:[#allocation9 + $0x101]] }
  0x91   : > { %s1846_s4 = sld [smem:[#allocation9 + $0x181]] }
  0x92   : > { %s1848_s28 = sld [smem:[#allocation9 + $0x201]] }
  0x93   : > { %722 = vrot.lane.b32.xlu0 %v720_v9, %s1509_s7  ;;  %v791_v9 = vrot.slane %v789_v62, 1  ;;  %v574_v62 = vmul.f32 %v1692_v33, %v573_v58  ;;  %s1850_s20 = sld [smem:[#allocation9 + $0x281]] }
  0x94   : > { %s1852_s19 = sld [smem:[#allocation9 + $0x301]] }
  0x95   : > { %v576_v5 = vrot.slane %v574_v62, 3  ;;  %s1857_s23 = sld [smem:[#allocation9 + $0x381]] }
  0x96   : > { %730 = vrot.lane.b32.xlu1 %v729_v11, %s1509_s7  ;;  %v928_v11 = vstv %s1772_s29  ;;  %s1820_s29 = sld [smem:[#allocation9 + $0x300]] }
  0x97   : > { %s1944_s8 = sld [smem:[#allocation9 + $0x103]] }
  0x98   : > { %862 = vrot.lane.b32.xlu2 %v860_v17, %s1509_s7  ;;  %v799_v17 = vrot.slane %v797_v8, 2  ;;  %v684_v58 = vstv %s1848_s28  ;;  %s1225_s28 = sld [smem:[#allocation7 + $0x3]] }
  0x9b   : > { %738 = vrot.lane.b32.xlu0 %v737_v18, %s1509_s7  ;;  %v929_v18 = vmul.f32 %v1728_v13, %v928_v11  ;;  %v693_v62 = vstv %s1857_s23  ;;  %s1180_s23 = sld [smem:[#allocation6 + $0x184]] }
  0x9e   : > { %870 = vrot.lane.b32.xlu1 %v869_v21, %s1509_s7  ;;  %v436_v21 = vrot.slane %v434_v14, 3 }
  0xa0   : > { %746 = vrot.lane.b32.xlu2 %v745_v24, %s1509_s7 }
  0xa3   : > { %878 = vrot.lane.b32.xlu0 %v877_v25, %s1509_s7  ;;  %v931_v25 = vrot.slane %v929_v18, 1 }
  0xa6   : > { %753 = vrot.lane.b32.xlu1 %v751_v29, %s1510_s6 }
  0xa8   : > { %886 = vrot.lane.b32.xlu2 %v885_v32, %s1509_s7  ;;  %s1753_s7 = sld [smem:[#allocation6 + $0x4]] }
  0xab   : > { %761 = vrot.lane.b32.xlu0 %v760_v34, %s1510_s6 }
  0xae   : > { %893 = vrot.lane.b32.xlu1 %v891_v38, %s1510_s6  ;;  %v427_v60 = vstv %s1753_s7  ;;  %s1810_s7 = sld [smem:[#allocation9 + $0x80]] }
  0xaf   : > { %v428_v2 = vmul.f32 %v427_v60, %v1667_v0  ;;  %v937_v0 = vmul.f32 %v1728_v13, %v936_v20 }
  0xb0   : > { %769 = vrot.lane.b32.xlu2 %v768_v43, %s1510_s6 }
  0xb1   : > { %v430_v12 = vrot.slane %v428_v2, 2  ;;  %v939_v30 = vrot.slane %v937_v0, 2  ;;  %v402_v0 = vstv %s1824_s14  ;;  %s1938_s14 = sld [smem:[#allocation9 + $0x382]] }
  0xb2   : > { %v1765_v50 = vpop.permute.xlu2 %473 }
  0xb3   : > { %901 = vrot.lane.b32.xlu0 %v900_v44, %s1510_s6  ;;  %v432_v22 = vadd.f32 %v430_v12, %v426_v15 }
  0xb5   : > { %v438_v28 = vadd.f32 %v436_v21, %v432_v22 }
  0xb6   : > { %777 = vrot.lane.b32.xlu1 %v776_v46, %s1510_s6  ;;  %v562_v46 = vmul.f32 %v1692_v33, %v561_v42  ;;  %v553_v42 = vstv %s1822_s13  ;;  %s1936_s13 = sld [smem:[#allocation9 + $0x302]] }
  0xb8   : > { %909 = vrot.lane.b32.xlu2 %v908_v54, %s1510_s6 }
  0xba   : > { %v482_v6 = vpop.permute.xlu2 %481 }
  0xbb   : > { %784 = vrot.lane.b32.xlu0 %v782_v55, %s1511_s15  ;;  %v564_v55 = vrot.slane %v562_v46, 1 }
  0xbe   : > { %917 = vrot.lane.b32.xlu1 %v916_v61, %s1510_s6  ;;  %s1144_s6 = sld [smem:[#allocation6 + $0x80]]  ;;  %v570_v61 = vrot.slane %v568_v56, 2  ;;  %v678_v56 = vstv %s1844_s3 }
  0xbf   : > { %s1224_s3 = sld [smem:[#allocation7 + $0x2]] }
  0xc0   : > { %792 = vrot.lane.b32.xlu2 %v791_v9, %s1511_s15 }
  0xc2   : > { %v505_v23 = vpop.permute.xlu2 %504 }
  0xc3   : > { %924 = vrot.lane.b32.xlu0 %v922_v10, %s1511_s15 }
  0xc4   : > { %v558_v41 = vstv %s1144_s6  ;;  %s1828_s6 = sld [smem:[#allocation10 + $0x2]] }
  0xc5   : > { %v443_v24 = vpop.permute.xlu0 %442  ;;  %v559_v45 = vmul.f32 %v1692_v33, %v558_v41  ;;  %v416_v41 = vstv %s1838_s0  ;;  %s1886_s0 = sld [smem:[#allocation6 + $0x100]] }
  0xc6   : > { %800 = vrot.lane.b32.xlu1 %v799_v17, %s1511_s15  ;;  %v445_v32 = vadd.f32 %v443_v24, %v438_v28  ;;  %v410_v28 = vstv %s1832_s9  ;;  %s1946_s9 = sld [smem:[#allocation9 + $0x183]] }
  0xc7   : > { %v560_v54 = vadd.f32 %v559_v45, %v396_v48  ;;  %v675_v48 = vstv %s1842_s2  ;;  %s1894_s2 = sld [smem:[#allocation6 + $0x104]] }
  0xc8   : > { %v459_v29 = vpop.permute.xlu1 %458  ;;  %932 = vrot.lane.b32.xlu2 %v931_v25, %s1511_s15  ;;  %v404_v25 = vstv %s1826_s16  ;;  %s1940_s16 = sld [smem:[#allocation9 + $0x3]] }
  0xca   : > { %v529_v35 = vpop.permute.xlu2 %528 }
  0xcb   : > { %808 = vrot.lane.b32.xlu0 %v807_v26, %s1511_s15  ;;  %v406_v26 = vstv %s1828_s6  ;;  %s1942_s6 = sld [smem:[#allocation9 + $0x83]] }
  0xcd   : > { %v451_v34 = vpop.permute.xlu0 %450 }
  0xce   : > { %940 = vrot.lane.b32.xlu1 %v939_v30, %s1511_s15  ;;  %v453_v36 = vadd.f32 %v451_v34, %v445_v32  ;;  %v414_v30 = vstv %s1836_s11  ;;  %v535_v32 = vstv %s1810_s7  ;;  %v538_v34 = vstv %s1812_s27  ;;  %s1924_s7 = sld [smem:[#allocation9 + $0x2]] }
  0xcf   : > { %s1926_s27 = sld [smem:[#allocation9 + $0x82]] }
  0xd0   : > { %v467_v38 = vpop.permute.xlu1 %466  ;;  %v461_v39 = vadd.f32 %v459_v29, %v453_v36  ;;  %948 = vrot.lane.b32.xlu2 %v947_v37, %s1511_s15  ;;  %s1806_s15 = sld [smem:[#allocation9]]  ;;  %v412_v29 = vstv %s1834_s10  ;;  %v541_v36 = vstv %s1814_s17  ;;  %v544_v37 = vstv %s1816_s26 }
  0xd1   : > { %s1928_s17 = sld [smem:[#allocation9 + $0x102]] }
  0xd2   : > { %v469_v40 = vadd.f32 %v467_v38, %v461_v39  ;;  %v599_v51 = vpop.permute.xlu2 %598  ;;  %v547_v38 = vstv %s1818_s24  ;;  %v550_v39 = vstv %s1820_s29  ;;  %s1930_s26 = sld [smem:[#allocation9 + $0x182]] }
  0xd3   : > { %s1932_s24 = sld [smem:[#allocation9 + $0x202]] }
  0xd4   : > { %v476_v43 = vadd.f32 %v1765_v50, %v469_v40  ;;  %v566_v50 = vadd.f32 %v564_v55, %v560_v54  ;;  %s1934_s29 = sld [smem:[#allocation9 + $0x282]] }
  0xd5   : > { %v490_v44 = vpop.permute.xlu0 %489  ;;  %s1948_s10 = sld [smem:[#allocation9 + $0x203]] }
  0xd6   : > { %v484_v47 = vadd.f32 %v482_v6, %v476_v43  ;;  %v572_v3 = vadd.f32 %v570_v61, %v566_v50  ;;  %v532_v31 = vstv %s1806_s15  ;;  %v687_v50 = vstv %s1850_s20  ;;  %s1177_s20 = sld [smem:[#allocation6 + $0x181]] }
  0xd7   : > { %v690_v61 = vstv %s1852_s19  ;;  %s1176_s19 = sld [smem:[#allocation6 + $0x180]] }
  0xd8   : > { %v492_v52 = vadd.f32 %v490_v44, %v484_v47  ;;  %v498_v53 = vpop.permute.xlu1 %497  ;;  %v578_v8 = vadd.f32 %v576_v5, %v572_v3  ;;  %v672_v44 = vstv %s1840_s1  ;;  %s1892_s1 = sld [smem:[#allocation6 + $0x101]] }
  0xd9   : > { %s1181_s15 = sld [smem:[#allocation6 + $0x185]] }
  0xda   : > { %v500_v57 = vadd.f32 %v498_v53, %v492_v52  ;;  %v622_v6 = vpop.permute.xlu2 %621  ;;  %s1950_s11 = sld [smem:[#allocation9 + $0x283]] }
  0xdc   : > { %v507_v59 = vadd.f32 %v505_v23, %v500_v57  ;;  %v681_v57 = vstv %s1846_s4  ;;  %s1165_s4 = sld [smem:[#allocation6 + $0x105]] }
  0xdd   : > { %v513_v60 = vpop.permute.xlu0 %512 }
  0xde   : > { %v515_v63 = vadd.f32 %v513_v60, %v507_v59 }
  0xe0   : > { %v521_v1 = vpop.permute.xlu1 %520 }
  0xe1   : > { %v523_v2 = vadd.f32 %v521_v1, %v515_v63 }
  0xe2   : > { %v645_v12 = vpop.permute.xlu2 %644 }
  0xe3   : > { %v1808_v7 = vadd.f32 %v529_v35, %v523_v2 }
  0xe5   : > { %v583_v9 = vpop.permute.xlu0 %582  ;;  %v533_v45 = vmul.f32 %v532_v31, %v1808_v7  ;;  %v536_v46 = vmul.f32 %v535_v32, %v1808_v7  ;;  %v539_v47 = vmul.f32 %v538_v34, %v1808_v7  ;;  %v545_v52 = vmul.f32 %v544_v37, %v1808_v7 }
  0xe6   : > { %v585_v10 = vadd.f32 %v583_v9, %v578_v8  ;;  %v548_v53 = vmul.f32 %v547_v38, %v1808_v7  ;;  %v551_v54 = vmul.f32 %v550_v39, %v1808_v7  ;;  %v554_v60 = vmul.f32 %v553_v42, %v1808_v7 }
  0xe7   : > { %v534_v63 = vadd.f32 %v533_v45, %v402_v0  ;;  %v537_v1 = vadd.f32 %v536_v46, %v404_v25  ;;  %v540_v2 = vadd.f32 %v539_v47, %v406_v26  ;;  %v398_v34 = vstv %s1224_s3  ;;  %s1237_s3 = sshll.u32 %s1563_s22, 3 }
  0xe8   : > { %v591_v33 = vpop.permute.xlu1 %590  ;;  %v549_v8 = vadd.f32 %v548_v53, %v412_v29  ;;  %v552_v9 = vadd.f32 %v551_v54, %v414_v30  ;;  %v701_v29 = vstv %s1892_s1  ;;  %v841_v42 = vstv %s1177_s20  ;;  %s1954_s1 = sld [smem:[#allocation9 + $0x383]]  ;;  %s996_s20 = scalar_lea.hbm %s2027_s5, %s1237_s3 }
  0xe9   : > { %v593_v11 = vadd.f32 %v591_v33, %v585_v10  ;;  %v702_v31 = vmul.f32 %v1719_v4, %v701_v29  ;;  %v847_v53 = vstv %s1180_s23 }
  0xea   : > { %v669_v21 = vpop.permute.xlu2 %668 }
  0xeb   : > { %v601_v14 = vadd.f32 %v599_v51, %v593_v11  ;;  %v542_v51 = vmul.f32 %v541_v36, %v1808_v7  ;;  %v704_v38 = vrot.slane %v702_v31, 1 }
  0xed   : > { %v607_v15 = vpop.permute.xlu0 %606  ;;  %v543_v5 = vadd.f32 %v542_v51, %v408_v27  ;;  %v842_v51 = vmul.f32 %v1728_v13, %v841_v42 }
  0xee   : > { %v609_v16 = vadd.f32 %v607_v15, %v601_v14 }
  0xf0   : > { %v614_v17 = vpop.permute.xlu1 %613 }
  0xf1   : > { %v616_v18 = vadd.f32 %v614_v17, %v609_v16 }
  0xf2   : > { %v1877_v49 = vpop.permute.xlu2 %862 }
  0xf3   : > { %v624_v19 = vadd.f32 %v622_v6, %v616_v18  ;;  %v546_v6 = vadd.f32 %v545_v52, %v410_v28  ;;  %v555_v18 = vadd.f32 %v554_v60, %v416_v41  ;;  %v698_v28 = vstv %s1886_s0  ;;  %s1952_s0 = sld [smem:[#allocation9 + $0x303]] }
  0xf4   : > { %v699_v30 = vmul.f32 %v1719_v4, %v698_v28  ;;  %v838_v41 = vstv %s1176_s19  ;;  %v400_v52 = vstv %s1225_s28  ;;  %v853_v60 = vstv %s1181_s15  ;;  %s1000_s28 = sshll.u32 %s996_s20, 4  ;;  %s986_s15 = scalar_lea.sflag [#allocation4], %s1644_s12  ;;  %s1001_s28 = int_to_ptr.hbm [resolvable:$true] %s1000_s28 }
  0xf5   : > { %v630_v20 = vpop.permute.xlu0 %629 }
  0xf6   : > { %v632_v22 = vadd.f32 %v630_v20, %v624_v19  ;;  %v700_v37 = vadd.f32 %v699_v30, %v398_v34 }
  0xf8   : > { %v638_v23 = vpop.permute.xlu1 %637 }
  0xf9   : > { %v640_v24 = vadd.f32 %v638_v23, %v632_v22 }
  0xfa   : > { %v747_v26 = vpop.permute.xlu2 %746 }
  0xfb   : > { %v647_v35 = vadd.f32 %v645_v12, %v640_v24 }
  0xfd   : > { %v653_v40 = vpop.permute.xlu0 %652 }
  0xfe   : > { %v655_v43 = vadd.f32 %v653_v40, %v647_v35  ;;  %v707_v35 = vstv %s1894_s2  ;;  %v713_v40 = vstv %s1165_s4  ;;  %s1128_s2 = sshll.u32 %s1644_s12, 3 }
  0xff   : > { %v708_v39 = vmul.f32 %v1719_v4, %v707_v35  ;;  %v714_v46 = vmul.f32 %v1719_v4, %v713_v40  ;;  %s296_s22 = scalar_lea.vmem [#allocation12], %s1128_s2 }
 0x100   : > { %v661_v55 = vpop.permute.xlu1 %660  ;;  %s998_s23 = sshll.u32 %s296_s22, 4  ;;  %s999_s23 = int_to_ptr.vmem [resolvable:$true] %s998_s23 }
 0x101   : > { %v663_v59 = vadd.f32 %v661_v55, %v655_v43  ;;  %v710_v45 = vrot.slane %v708_v39, 2 }
 0x102   : > { %v887_v43 = vpop.permute.xlu2 %886 }
 0x103   : > { %v671_v3 = vadd.f32 %v669_v21, %v663_v59  ;;  %v848_v59 = vmul.f32 %v1728_v13, %v847_v53 }
 0x105   : > { %v673_v33 = vmul.f32 %v672_v44, %v671_v3  ;;  %v676_v10 = vmul.f32 %v675_v48, %v671_v3  ;;  %v679_v11 = vmul.f32 %v678_v56, %v671_v3  ;;  %v682_v12 = vmul.f32 %v681_v57, %v671_v3  ;;  %v723_v7 = vpop.permute.xlu0 %722 }
 0x106   : > { %v685_v14 = vmul.f32 %v684_v58, %v671_v3  ;;  %v688_v15 = vmul.f32 %v687_v50, %v671_v3  ;;  %v691_v16 = vmul.f32 %v690_v61, %v671_v3  ;;  %v694_v17 = vmul.f32 %v693_v62, %v671_v3 }
 0x107   : > { %v1896_v19 = vadd.f32 %v673_v33, %v534_v63  ;;  %v1898_v20 = vadd.f32 %v676_v10, %v537_v1  ;;  %v1900_v21 = vadd.f32 %v679_v11, %v540_v2  ;;  %v1902_v23 = vadd.f32 %v682_v12, %v543_v5 }
 0x108   : > { %v731_v22 = vpop.permute.xlu1 %730  ;;  %v1904_v24 = vadd.f32 %v685_v14, %v546_v6  ;;  %v1906_v0 = vadd.f32 %v688_v15, %v549_v8  ;;  %v1908_v25 = vadd.f32 %v691_v16, %v552_v9  ;;  %v1910_v27 = vadd.f32 %v694_v17, %v555_v18 }
 0x109   : > { %v706_v44 = vadd.f32 %v704_v38, %v700_v37  ;;  %v839_v48 = vmul.f32 %v1728_v13, %v838_v41  ;;  %v716_v56 = vrot.slane %v714_v46, 3  ;;  %v844_v58 = vrot.slane %v842_v51, 1 }
 0x10a   : > { %v770_v62 = vpop.permute.xlu2 %769  ;;  %v850_v4 = vrot.slane %v848_v59, 2  ;;  %v854_v1 = vmul.f32 %v1728_v13, %v853_v60  ;;  %v818_v46 = vstv %s1928_s17  ;;  %v827_v51 = vstv %s1934_s29 }
 0x10b   : > { %v712_v55 = vadd.f32 %v710_v45, %v706_v44  ;;  %v840_v57 = vadd.f32 %v839_v48, %v400_v52  ;;  %v812_v44 = vstv %s1924_s7  ;;  %v815_v45 = vstv %s1926_s27  ;;  %s1437_s7 = sshra.s32 %s1001_s28, 4  ;;  %s1438_s7 = int_to_ptr.hbm [resolvable:$true] %s1437_s7 }
 0x10c   : > { %v856_v6 = vrot.slane %v854_v1, 3  ;;  %v824_v48 = vstv %s1932_s24  ;;  %v830_v52 = vstv %s1936_s13  ;;  %v967_v1 = vstv %s1950_s11  ;;  %s1439_s27 = scalar_lea.hbm %s1438_s7, 8  ;;  %s1443_s24 = scalar_lea.hbm %s2027_s5, 16 }
 0x10d   : > { %v739_v32 = vpop.permute.xlu0 %738  ;;  %v718_v50 = vadd.f32 %v716_v56, %v712_v55  ;;  %v846_v63 = vadd.f32 %v844_v58, %v840_v57  ;;  %v833_v55 = vstv %s1938_s14  ;;  %v952_v56 = vstv %s1940_s16  ;;  %p1440_p1 = scmp.ne.s32.totalorder %s1438_s7, %s1439_s27  ;;  %p1444_p9 = scmp.lt.s32.totalorder %s1438_s7, %s2027_s5 }
 0x10e   : > { %v955_v57 = vstv %s1942_s6  ;;  %p1445_p10 = scmp.lt.s32.totalorder %s1443_s24, %s1439_s27 }
 0x10f   : > { %v725_v3 = vadd.f32 %v723_v7, %v718_v50  ;;  %v852_v5 = vadd.f32 %v850_v4, %v846_v63  ;;  %v958_v50 = vstv %s1944_s8  ;;  %v961_v63 = vstv %s1946_s9  ;;  %p1441_p4 = pnand %p1440_p1, %p1617_p5 }
 0x110   : > { %v871_v36 = vpop.permute.xlu1 %870  ;;  %v964_v4 = vstv %s1948_s10  ;;  %p1446_p2 = por %p1445_p10, %p1444_p9 }
 0x111   : > { %v733_v8 = vadd.f32 %v731_v22, %v725_v3  ;;  %v858_v33 = vadd.f32 %v856_v6, %v852_v5  ;;  %v970_v5 = vstv %s1952_s0  ;;  %v973_v6 = vstv %s1954_s1  ;;  %p1442_p8 = pneg %p1441_p4 }
 0x112   : > { %v910_v11 = vpop.permute.xlu2 %909 }
 0x113   : > { %v741_v10 = vadd.f32 %v739_v32, %v733_v8  ;;  %v865_v14 = vadd.f32 %v1877_v49, %v858_v33  ;;  %p1447_p11 = pnand %p1446_p2, %p1442_p8 }
 0x115   : > { %v879_v47 = vpop.permute.xlu0 %878  ;;  %v749_v15 = vadd.f32 %v747_v26, %v741_v10  ;;  %v873_v16 = vadd.f32 %v871_v36, %v865_v14 }
 0x117   : > { %v881_v28 = vadd.f32 %v879_v47, %v873_v16  ;;  %v821_v47 = vstv %s1930_s26 }
 0x118   : > { %v754_v54 = vpop.permute.xlu1 %753 }
 0x119   : > { %v756_v17 = vadd.f32 %v754_v54, %v749_v15  ;;  %v889_v29 = vadd.f32 %v887_v43, %v881_v28 }
 0x11a   : > { %v793_v22 = vpop.permute.xlu2 %792 }
 0x11d   : > { %v762_v61 = vpop.permute.xlu0 %761 }
 0x11e   : > { %v764_v13 = vadd.f32 %v762_v61, %v756_v17 }
 0x120   : > { %v894_v2 = vpop.permute.xlu1 %893  ;;  %v772_v49 = vadd.f32 %v770_v62, %v764_v13 }
 0x121   : > { %v896_v26 = vadd.f32 %v894_v2, %v889_v29 }
 0x122   : > { %v933_v38 = vpop.permute.xlu2 %932 }
 0x125   : > { %v902_v9 = vpop.permute.xlu0 %901 }
 0x126   : > { %v904_v32 = vadd.f32 %v902_v9, %v896_v26 }
 0x128   : > { %v778_v12 = vpop.permute.xlu1 %777  ;;  %v912_v36 = vadd.f32 %v910_v11, %v904_v32 }
 0x129   : > { %v780_v30 = vadd.f32 %v778_v12, %v772_v49 }
 0x12a   : > { %v949_v61 = vpop.permute.xlu2 %948 }
 0x12d   : > { %v785_v18 = vpop.permute.xlu0 %784 }
 0x12e   : > { %v787_v34 = vadd.f32 %v785_v18, %v780_v30 }
 0x130   : > { %v918_v7 = vpop.permute.xlu1 %917  ;;  %v795_v37 = vadd.f32 %v793_v22, %v787_v34 }
 0x131   : > { %v920_v39 = vadd.f32 %v918_v7, %v912_v36 }
 0x135   : > { %v925_v31 = vpop.permute.xlu0 %924 }
 0x136   : > { %v927_v42 = vadd.f32 %v925_v31, %v920_v39 }
 0x138   : > { %v801_v35 = vpop.permute.xlu1 %800  ;;  %v935_v54 = vadd.f32 %v933_v38, %v927_v42 }
 0x139   : > { %v803_v40 = vadd.f32 %v801_v35, %v795_v37 }
 0x13d   : > { %v809_v41 = vpop.permute.xlu0 %808 }
 0x13e   : > { %v811_v43 = vadd.f32 %v809_v41, %v803_v40 }
 0x140   : > { %v941_v53 = vpop.permute.xlu1 %940  ;;  %v813_v58 = vmul.f32 %v812_v44, %v811_v43  ;;  %v816_v59 = vmul.f32 %v815_v45, %v811_v43  ;;  %v819_v60 = vmul.f32 %v818_v46, %v811_v43  ;;  %v822_v2 = vmul.f32 %v821_v47, %v811_v43 }
 0x141   : > { %v943_v62 = vadd.f32 %v941_v53, %v935_v54  ;;  %v825_v3 = vmul.f32 %v824_v48, %v811_v43  ;;  %v828_v8 = vmul.f32 %v827_v51, %v811_v43  ;;  %v831_v9 = vmul.f32 %v830_v52, %v811_v43 }
 0x142   : > { %v814_v10 = vadd.f32 %v813_v58, %v1896_v19  ;;  %v817_v11 = vadd.f32 %v816_v59, %v1898_v20  ;;  %v820_v12 = vadd.f32 %v819_v60, %v1900_v21  ;;  %v834_v14 = vmul.f32 %v833_v55, %v811_v43 }
 0x143   : > { %v951_v33 = vadd.f32 %v949_v61, %v943_v62  ;;  %v823_v28 = vadd.f32 %v822_v2, %v1902_v23  ;;  %v826_v13 = vadd.f32 %v825_v3, %v1904_v24  ;;  %v829_v20 = vadd.f32 %v828_v8, %v1906_v0 }
 0x144   : > { %v832_v31 = vadd.f32 %v831_v9, %v1908_v25  ;;  %v835_v23 = vadd.f32 %v834_v14, %v1910_v27 }
 0x145   : > { %v953_v15 = vmul.f32 %v952_v56, %v951_v33  ;;  %v956_v16 = vmul.f32 %v955_v57, %v951_v33  ;;  %v959_v17 = vmul.f32 %v958_v50, %v951_v33  ;;  %v962_v18 = vmul.f32 %v961_v63, %v951_v33 }
 0x146   : > { %v965_v7 = vmul.f32 %v964_v4, %v951_v33  ;;  %v968_v22 = vmul.f32 %v967_v1, %v951_v33  ;;  %v971_v29 = vmul.f32 %v970_v5, %v951_v33  ;;  %v974_v30 = vmul.f32 %v973_v6, %v951_v33 }
 0x147   : > { %v954_v49 = vadd.f32 %v953_v15, %v814_v10  ;;  %v957_v26 = vadd.f32 %v956_v16, %v817_v11  ;;  %v960_v19 = vadd.f32 %v959_v17, %v820_v12  ;;  %v963_v21 = vadd.f32 %v962_v18, %v823_v28 }
 0x148   : > { %v966_v32 = vadd.f32 %v965_v7, %v826_v13  ;;  %v969_v24 = vadd.f32 %v968_v22, %v829_v20  ;;  %v972_v34 = vadd.f32 %v971_v29, %v832_v31  ;;  %v975_v0 = vadd.f32 %v974_v30, %v835_v23 }
 0x149   : > { %977 = vst.msk [vmem:[%s296_s22] sm:$0x1] %vm976_vm0, %v954_v49 }
 0x14a   : > { %978 = vst.msk [vmem:[%s296_s22 + $0x1] sm:$0x1] %vm976_vm0, %v957_v26 }
 0x14b   : > { %979 = vst.msk [vmem:[%s296_s22 + $0x2] sm:$0x1] %vm976_vm0, %v960_v19 }
 0x14c   : > { %980 = vst.msk [vmem:[%s296_s22 + $0x3] sm:$0x1] %vm976_vm0, %v963_v21 }
 0x14d   : > { %981 = vst.msk [vmem:[%s296_s22 + $0x4] sm:$0x1] %vm976_vm0, %v966_v32 }
 0x14e   : > { %982 = vst.msk [vmem:[%s296_s22 + $0x5] sm:$0x1] %vm976_vm0, %v969_v24 }
 0x14f   : > { %983 = vst.msk [vmem:[%s296_s22 + $0x6] sm:$0x1] %vm976_vm0, %v972_v34 }
 0x150   : > { %984 = vst.msk [vmem:[%s296_s22 + $0x7] sm:$0x1] %vm976_vm0, %v975_v0 }
 0x151   : > { %1450 = shalt.err (!%p1447_p11)
}
 0x152   : > { %1259 = dma.vmem_to_hbm [thread:$0]  (%p1617_p5), %s999_s23, 128, %s1001_s28, %s986_s15  }
 0x153 PF: > { %s1012_s12 = sand.u32 1, %s1489_s18   ;;  %p2051_p12 = scmp.ge.s32.totalorder %s1501_s21, 2 }
 0x154   : > { %s1013_s14 = scalar_lea.sflag [#allocation4], %s1012_s12 }
 0x155   : > { %p1279_p13 = pnand %p2051_p12, %p1577_p6 }
 0x157   : > { %p1280_p0 = pneg %p1279_p13 }
 0x159   : > { %1484 = dma.done.wait (%p1280_p0), %s1013_s14, 128  }
 0x15a   : > { %1486 = vsyncadd (%p1280_p0), %s1013_s14, 4294967168  ;;  %s2052_s21 = sld [smem:[#allocation20_spill]] }
 0x15b   : > { %s2053_s18 = sld [smem:[#allocation18_spill]] }
 0x15c   : > { %s2054_s19 = sld [smem:[#allocation19_spill]] }
 0x15d   : > { %s2055_s20 = sld [smem:[#allocation21_spill]] }
 0x160   : > { %p21_p3 = scmp.ge.s32.totalorder %s2052_s21, 4  }
 0x162   :  { %23 = sbr.rel (!%p21_p3) target bundleno = 14 (0xe), region = 105 }
 0x167   :  { %1019 = vsyncpa [#allocation3], 1 }
 0x168   :  { %1021 = vsyncpa [#allocation3 + $0x1], 1 }
 0x169   :  { %1022 = vsyncpa [#allocation4], 1 }
 0x16a   :  { %1024 = vsyncpa [#allocation4 + $0x1], 1 }
 0x16b   :  { %1025 = vsyncpa [#allocation5], 1 }
 0x16c   :  { %1027 = vsyncpa [#allocation5 + $0x1], 1 }
 0x16d   :  { %1028 = vsyncpa [#allocation8], 1 }
 0x16e   :  { %1029 = vsyncpa [#allocation11], 1 }

</bundles_post_ra>
